<compile_context>
chip_gen: v6e
topology: v6e:2x2x1
jax: 0.10.0
libtpu: 0.0.40
codegen_flags: <defaults>
</compile_context>

<pallas_src>
import functools

import jax
import jax.numpy as jnp
from jax.experimental import pallas as pl
from jax.experimental.pallas import tpu as pltpu


# ----------------------------- configuration --------------------------------

OBJECT_DIM = 32
JOINT_DIM = 16
POINT_DIM = 3
IN_DIM = OBJECT_DIM + JOINT_DIM + POINT_DIM   # 51 packed columns actually used
PACKED_DIM = 64                               # padded to a sublane-aligned K
CFG_DIMS = [64, 64, 64]                       # cfg.dims
JOINT_CONFIG_IN = (0, 2)                      # cfg.joint_config_in
XYZ_POINT_IN = (2,)                           # cfg.xyz_point_in
D0 = CFG_DIMS[0]                              # layer-0 output width (64)
MAX_TILE_N = 4096                             # cap keeps v7x (64 MiB VMEM) safe


def layer_dims():
    """Replicates the dims bookkeeping from Decoder.__init__."""
    first = OBJECT_DIM + (JOINT_DIM if 0 in JOINT_CONFIG_IN else 0)
    dims = [first] + CFG_DIMS + [1]
    num_layers = len(dims)
    per_layer = []
    for layer in range(num_layers - 1):
        out_dim = dims[layer + 1]
        if layer + 1 in JOINT_CONFIG_IN:
            out_dim -= JOINT_DIM
        if layer + 1 in XYZ_POINT_IN:
            out_dim -= POINT_DIM
        per_layer.append((dims[layer], out_dim))
    return per_layer


# ------------------------------- the kernel ---------------------------------

def decoder_kernel(x_ref, wx_ref, b0_ref, w1_ref, b1_ref,
                   w2a_ref, b2_ref, w3_ref, b3_ref, out_ref):
    # x: (T, 64) bf16 = [obj(0:32) | jcc(32:48) | pts(48:51) | zeros(51:64)]
    x = x_ref[...]

    # Fused matmul: one MXU pass computes layer-0 pre-activation AND layer-2
    # skip term.  wx = [w0_padded | w2_skip] (64, 128), zero-padded rows make
    # the torch concats exact:  cat([obj,jcc]) @ w0 == x64 @ w0_padded, etc.
    y = jnp.dot(x, wx_ref[...], preferred_element_type=jnp.float32)   # (T,128)
    skip = y[:, D0:]                              # layer-2 skip, kept in f32

    # Layer 0 + ReLU
    h = jnp.maximum(y[:, :D0] + b0_ref[...], 0.0)

    # Layer 1 + ReLU
    h = jnp.dot(h.astype(jnp.bfloat16), w1_ref[...],
                preferred_element_type=jnp.float32) + b1_ref[...]
    h = jnp.maximum(h, 0.0)

    # Layer 2: h @ w2a + (x64 @ w2_skip) + b2, then ReLU
    h = jnp.dot(h.astype(jnp.bfloat16), w2a_ref[...],
                preferred_element_type=jnp.float32) + skip + b2_ref[...]
    h = jnp.maximum(h, 0.0)

    # Layer 3 (64 -> 1), then lane-dense epilogue: pack (T,1) -> (T//128,128)
    # before bias + tanh + store so the store path is unmasked 128-lane vst.
    h = jnp.dot(h.astype(jnp.bfloat16), w3_ref[...],
                preferred_element_type=jnp.float32)           # (T, 1)
    h = h.reshape(out_ref.shape)                              # (T//128, 128)
    out_ref[...] = jnp.tanh(h + b3_ref[...])


# ------------------------------ tiling helpers -------------------------------

def pick_tile_n(n):
    """Rows per grid step.  Multiples of 128; >=2 grid steps for moderate N
    (v7x 2-TC sharding); grows to MAX_TILE_N for large N (v5e/v6e throughput)."""
    n128 = pl.cdiv(max(int(n), 1), 128) * 128
    if n128 <= 1024:
        return n128                      # single small tile, minimal padding
    tile = 1024
    while tile * 2 <= MAX_TILE_N and n >= 4 * tile:
        tile *= 2
    return tile


def pack_decoder_inputs(object_codes, joint_config_codes, points, tile_n):
    """Pack the three inputs into the (M, 64) bf16 layout the kernel consumes,
    row-padded to a multiple of tile_n.  Callers on the hot path can produce
    this once themselves and call decoder_forward_packed directly, skipping
    the concat/cast/pad HBM pass entirely."""
    n = object_codes.shape[0]
    n_pad = pl.cdiv(n, tile_n) * tile_n
    x = jnp.concatenate([object_codes, joint_config_codes, points], axis=1)
    x = jnp.pad(x.astype(jnp.bfloat16),
                ((0, n_pad - n), (0, PACKED_DIM - IN_DIM)))
    return x


# ------------------------------- the wrappers ---------------------------------

@functools.partial(jax.jit, static_argnames=("tile_n",))
def decoder_forward_packed(x_packed, params, *, tile_n):
    """x_packed: (M, 64) bf16 from pack_decoder_inputs (M % tile_n == 0).
    Returns (M, 1) f32 SDF values (padded rows included)."""
    m, k = x_packed.shape
    if k != PACKED_DIM or tile_n % 128 != 0 or m % tile_n != 0:
        raise ValueError(f"bad packed shape {x_packed.shape} for tile_n={tile_n}")

    (w0, b0), (w1, b1), (w2, b2), (w3, b3) = params
    d0, d2 = w0.shape[1], w2.shape[1]
    x2_dim = w2.shape[0] - JOINT_DIM - POINT_DIM        # 45

    # Fused x-weight: columns [0:d0] = zero-padded w0, columns [d0:] = w2 skip
    # rows (jcc/pts) mapped onto packed columns 32:51, zeros elsewhere.
    wx = jnp.zeros((PACKED_DIM, d0 + d2), jnp.float32)
    wx = wx.at[:w0.shape[0], :d0].set(w0)
    wx = wx.at[OBJECT_DIM:OBJECT_DIM + JOINT_DIM + POINT_DIM, d0:].set(w2[x2_dim:])
    w2a = w2[:x2_dim]                                    # (45, 64)

    bf16 = lambda a: a.astype(jnp.bfloat16)
    weight_args = (bf16(wx), b0, bf16(w1), b1, bf16(w2a), b2, bf16(w3),
                   b3.reshape(1, 1))

    def const_spec(arr):
        # Constant block index => fetched once, resident across grid steps.
        # (Weights total ~30 KB; not worth pipeline_mode tuning.)
        return pl.BlockSpec(arr.shape, lambda i: (0, 0))

    grid = m // tile_n
    out_rows = tile_n // 128
    grid_spec = pltpu.PrefetchScalarGridSpec(
        num_scalar_prefetch=0,
        grid=(grid,),
        in_specs=[pl.BlockSpec((tile_n, PACKED_DIM), lambda i: (i, 0))]
                 + [const_spec(w) for w in weight_args],
        out_specs=pl.BlockSpec((out_rows, 128), lambda i: (i, 0)),
    )

    out = pl.pallas_call(
        decoder_kernel,
        out_shape=jax.ShapeDtypeStruct((grid * out_rows, 128), jnp.float32),
        grid_spec=grid_spec,
        compiler_params=pltpu.CompilerParams(
            dimension_semantics=("parallel",),
            # Right-sized: ~16 MiB needed at tile_n=4096; leave headroom but
            # never request v7x's entire 64 MiB physical VMEM.
            vmem_limit_bytes=32 << 20),
    )(x_packed, *weight_args)

    return out.reshape(m, 1)                 # lane-dense -> (M, 1), free in XLA


@functools.partial(jax.jit, static_argnames=("tile_n",))
def decoder_forward(object_codes, joint_config_codes, points, params,
                    tile_n=None):
    """object_codes (N,32), joint_config_codes (N,16), points (N,3) -> (N,1)."""
    n = object_codes.shape[0]
    if tile_n is None:
        tile_n = pick_tile_n(n)
    x = pack_decoder_inputs(object_codes, joint_config_codes, points, tile_n)
    out = decoder_forward_packed(x, params, tile_n=tile_n)
    return out[:n]


# --------------------------- reference (pure JAX) ----------------------------

def decoder_reference(object_codes, joint_config_codes, points, params):
    """Direct transcription of the PyTorch forward (eval mode, no dropout)."""
    x = object_codes
    num_linear = len(params)
    for layer, (w, b) in enumerate(params):
        if layer in JOINT_CONFIG_IN:
            x = jnp.concatenate([x, joint_config_codes], axis=1)
        if layer in XYZ_POINT_IN:
            x = jnp.concatenate([x, points], axis=1)
        x = x @ w + b
        if layer < num_linear - 1:
            x = jax.nn.relu(x)
    return jnp.tanh(x)


# --------------------------------- main ---------------------------------------

def make_params(key):
    """Deterministic nn.Linear-style init; weights stored (in, out)."""
    params = []
    for (din, dout) in layer_dims():
        key, kw, kb = jax.random.split(key, 3)
        bound = 1.0 / jnp.sqrt(jnp.float32(din))
        w = jax.random.uniform(kw, (din, dout), jnp.float32, -bound, bound)
        b = jax.random.uniform(kb, (1, dout), jnp.float32, -bound, bound)
        params.append((w, b))
    return params


if __name__ == "__main__":
    key = jax.random.PRNGKey(0)
    k_obj, k_jcc, k_pts, k_par = jax.random.split(key, 4)
    params = make_params(k_par)

    # Case 1: small ragged N (single minimal tile, exercises padding path).
    # Case 2: moderate N (multi-tile grid, exercises the production path).
    for N in (300, 2500):
        ko, kj, kp = jax.random.split(jax.random.fold_in(k_obj, N), 3)
        object_codes = jax.random.normal(ko, (N, OBJECT_DIM), jnp.float32)
        joint_config_codes = jax.random.normal(kj, (N, JOINT_DIM), jnp.float32)
        points = jax.random.uniform(kp, (N, POINT_DIM), jnp.float32, -1.0, 1.0)

        out = decoder_forward(object_codes, joint_config_codes, points, params)
        out = jax.block_until_ready(out)
        ref = decoder_reference(object_codes, joint_config_codes, points, params)

        assert out.shape == (N, 1), out.shape
        # bf16 inputs/weights with f32 accumulation: compare against the f32
        # reference with a correspondingly looser tolerance.
        max_err = float(jnp.max(jnp.abs(out - ref)))
        assert max_err < 5e-2, (N, max_err)

    # TODO(synk): latent_dropout / per-layer dropout and the (Lipschitz) weight
    # normalizers are training-time parameter transforms; the kernel implements
    # the eval-mode forward on plain (already-normalized) weights.
    print("KERNEL_OK")
</pallas_src>

<mosaic_0001>
module attributes {stable_mosaic.version = 11 : i64} {
  func.func @decoder_kernel(%arg0: i32, %arg1: memref<384x64xbf16, #tpu.memory_space<vmem>>, %arg2: memref<64x128xbf16, #tpu.memory_space<vmem>>, %arg3: memref<1x64xf32, #tpu.memory_space<vmem>>, %arg4: memref<64x45xbf16, #tpu.memory_space<vmem>>, %arg5: memref<1x45xf32, #tpu.memory_space<vmem>>, %arg6: memref<45x64xbf16, #tpu.memory_space<vmem>>, %arg7: memref<1x64xf32, #tpu.memory_space<vmem>>, %arg8: memref<64x1xbf16, #tpu.memory_space<vmem>>, %arg9: memref<1x1xf32, #tpu.memory_space<vmem>>, %arg10: memref<3x128xf32, #tpu.memory_space<vmem>>) attributes {dimension_semantics = [#tpu.dimension_semantics<parallel>], iteration_bounds = array<i64: 1>, scalar_prefetch = 0 : i64, scratch_operands = 0 : i64, tpu.core_type = #tpu.core_type<tc>, window_params = [{transform_indices = @transform_0, window_bounds = array<i64: 384, 64>}, {pipeline_mode = #tpu.pipeline_mode<synchronous>, transform_indices = @transform_1, window_bounds = array<i64: 64, 128>}, {pipeline_mode = #tpu.pipeline_mode<synchronous>, transform_indices = @transform_2, window_bounds = array<i64: 1, 64>}, {pipeline_mode = #tpu.pipeline_mode<synchronous>, transform_indices = @transform_3, window_bounds = array<i64: 64, 45>}, {pipeline_mode = #tpu.pipeline_mode<synchronous>, transform_indices = @transform_4, window_bounds = array<i64: 1, 45>}, {pipeline_mode = #tpu.pipeline_mode<synchronous>, transform_indices = @transform_5, window_bounds = array<i64: 45, 64>}, {pipeline_mode = #tpu.pipeline_mode<synchronous>, transform_indices = @transform_6, window_bounds = array<i64: 1, 64>}, {pipeline_mode = #tpu.pipeline_mode<synchronous>, transform_indices = @transform_7, window_bounds = array<i64: 64, 1>}, {pipeline_mode = #tpu.pipeline_mode<synchronous>, transform_indices = @transform_8, window_bounds = array<i64: 1, 1>}, {transform_indices = @transform_9, window_bounds = array<i64: 3, 128>}]} {
    %c0 = arith.constant 0 : index
    %c0_0 = arith.constant 0 : index
    %0 = vector.load %arg1[%c0, %c0_0] : memref<384x64xbf16, #tpu.memory_space<vmem>>, vector<384x64xbf16>
    %c0_1 = arith.constant 0 : index
    %c0_2 = arith.constant 0 : index
    %1 = vector.load %arg2[%c0_1, %c0_2] : memref<64x128xbf16, #tpu.memory_space<vmem>>, vector<64x128xbf16>
    %cst = arith.constant dense<0.000000e+00> : vector<384x128xf32>
    %2 = tpu.matmul %0, %1, %cst {dimension_numbers = #tpu.dot_dimension_numbers<[1], [0], [0], [1], [0, 0, 1, 1], [], []>} : vector<384x64xbf16>, vector<64x128xbf16>, vector<384x128xf32> -> vector<384x128xf32>
    %3 = vector.extract_strided_slice %2 {offsets = [0, 64], sizes = [384, 64], strides = [1, 1]} : vector<384x128xf32> to vector<384x64xf32>
    %4 = vector.extract_strided_slice %2 {offsets = [0, 0], sizes = [384, 64], strides = [1, 1]} : vector<384x128xf32> to vector<384x64xf32>
    %c0_3 = arith.constant 0 : index
    %c0_4 = arith.constant 0 : index
    %5 = vector.load %arg3[%c0_3, %c0_4] : memref<1x64xf32, #tpu.memory_space<vmem>>, vector<1x64xf32>
    %6 = vector.broadcast %5 : vector<1x64xf32> to vector<384x64xf32>
    %7 = arith.addf %4, %6 : vector<384x64xf32>
    %cst_5 = arith.constant 0.000000e+00 : f32
    %8 = vector.broadcast %cst_5 : f32 to vector<384x64xf32>
    %9 = arith.maximumf %7, %8 : vector<384x64xf32>
    %10 = arith.truncf %9 : vector<384x64xf32> to vector<384x64xbf16>
    %c0_6 = arith.constant 0 : index
    %c0_7 = arith.constant 0 : index
    %11 = vector.load %arg4[%c0_6, %c0_7] : memref<64x45xbf16, #tpu.memory_space<vmem>>, vector<64x45xbf16>
    %cst_8 = arith.constant dense<0.000000e+00> : vector<384x45xf32>
    %12 = tpu.matmul %10, %11, %cst_8 {dimension_numbers = #tpu.dot_dimension_numbers<[1], [0], [0], [1], [0, 0, 1, 1], [], []>} : vector<384x64xbf16>, vector<64x45xbf16>, vector<384x45xf32> -> vector<384x45xf32>
    %c0_9 = arith.constant 0 : index
    %c0_10 = arith.constant 0 : index
    %13 = vector.load %arg5[%c0_9, %c0_10] : memref<1x45xf32, #tpu.memory_space<vmem>>, vector<1x45xf32>
    %14 = vector.broadcast %13 : vector<1x45xf32> to vector<384x45xf32>
    %15 = arith.addf %12, %14 : vector<384x45xf32>
    %cst_11 = arith.constant 0.000000e+00 : f32
    %16 = vector.broadcast %cst_11 : f32 to vector<384x45xf32>
    %17 = arith.maximumf %15, %16 : vector<384x45xf32>
    %18 = arith.truncf %17 : vector<384x45xf32> to vector<384x45xbf16>
    %c0_12 = arith.constant 0 : index
    %c0_13 = arith.constant 0 : index
    %19 = vector.load %arg6[%c0_12, %c0_13] : memref<45x64xbf16, #tpu.memory_space<vmem>>, vector<45x64xbf16>
    %cst_14 = arith.constant dense<0.000000e+00> : vector<384x64xf32>
    %20 = tpu.matmul %18, %19, %cst_14 {dimension_numbers = #tpu.dot_dimension_numbers<[1], [0], [0], [1], [0, 0, 1, 1], [], []>} : vector<384x45xbf16>, vector<45x64xbf16>, vector<384x64xf32> -> vector<384x64xf32>
    %21 = arith.addf %20, %3 : vector<384x64xf32>
    %c0_15 = arith.constant 0 : index
    %c0_16 = arith.constant 0 : index
    %22 = vector.load %arg7[%c0_15, %c0_16] : memref<1x64xf32, #tpu.memory_space<vmem>>, vector<1x64xf32>
    %23 = vector.broadcast %22 : vector<1x64xf32> to vector<384x64xf32>
    %24 = arith.addf %21, %23 : vector<384x64xf32>
    %cst_17 = arith.constant 0.000000e+00 : f32
    %25 = vector.broadcast %cst_17 : f32 to vector<384x64xf32>
    %26 = arith.maximumf %24, %25 : vector<384x64xf32>
    %27 = arith.truncf %26 : vector<384x64xf32> to vector<384x64xbf16>
    %c0_18 = arith.constant 0 : index
    %c0_19 = arith.constant 0 : index
    %28 = vector.load %arg8[%c0_18, %c0_19] : memref<64x1xbf16, #tpu.memory_space<vmem>>, vector<64x1xbf16>
    %cst_20 = arith.constant dense<0.000000e+00> : vector<384x1xf32>
    %29 = tpu.matmul %27, %28, %cst_20 {dimension_numbers = #tpu.dot_dimension_numbers<[1], [0], [0], [1], [0, 0, 1, 1], [], []>} : vector<384x64xbf16>, vector<64x1xbf16>, vector<384x1xf32> -> vector<384x1xf32>
    %30 = vector.shape_cast %29 : vector<384x1xf32> to vector<3x128xf32>
    %c0_21 = arith.constant 0 : index
    %c0_22 = arith.constant 0 : index
    %31 = vector.load %arg9[%c0_21, %c0_22] : memref<1x1xf32, #tpu.memory_space<vmem>>, vector<1x1xf32>
    %32 = vector.broadcast %31 : vector<1x1xf32> to vector<3x128xf32>
    %33 = arith.addf %30, %32 : vector<3x128xf32>
    %34 = math.tanh %33 : vector<3x128xf32>
    %c0_23 = arith.constant 0 : index
    %c0_24 = arith.constant 0 : index
    %35 = vector.load %arg10[%c0_23, %c0_24] : memref<3x128xf32, #tpu.memory_space<vmem>>, vector<3x128xf32>
    tpu.vector_store %arg10[%c0_23, %c0_24], %34 {strides = array<i32>} : memref<3x128xf32, #tpu.memory_space<vmem>>, vector<3x128xf32>,
    return
  }
  func.func @transform_0(%arg0: i32) -> (i32, i32) {
    %c0_i32 = arith.constant 0 : i32
    %c0_i32_0 = arith.constant 0 : i32
    return %arg0, %c0_i32 : i32, i32
  }
  func.func @transform_1(%arg0: i32) -> (i32, i32) {
    %c0_i32 = arith.constant 0 : i32
    %c0_i32_0 = arith.constant 0 : i32
    %c0_i32_1 = arith.constant 0 : i32
    return %c0_i32, %c0_i32_0 : i32, i32
  }
  func.func @transform_2(%arg0: i32) -> (i32, i32) {
    %c0_i32 = arith.constant 0 : i32
    %c0_i32_0 = arith.constant 0 : i32
    %c0_i32_1 = arith.constant 0 : i32
    return %c0_i32, %c0_i32_0 : i32, i32
  }
  func.func @transform_3(%arg0: i32) -> (i32, i32) {
    %c0_i32 = arith.constant 0 : i32
    %c0_i32_0 = arith.constant 0 : i32
    %c0_i32_1 = arith.constant 0 : i32
    return %c0_i32, %c0_i32_0 : i32, i32
  }
  func.func @transform_4(%arg0: i32) -> (i32, i32) {
    %c0_i32 = arith.constant 0 : i32
    %c0_i32_0 = arith.constant 0 : i32
    %c0_i32_1 = arith.constant 0 : i32
    return %c0_i32, %c0_i32_0 : i32, i32
  }
  func.func @transform_5(%arg0: i32) -> (i32, i32) {
    %c0_i32 = arith.constant 0 : i32
    %c0_i32_0 = arith.constant 0 : i32
    %c0_i32_1 = arith.constant 0 : i32
    return %c0_i32, %c0_i32_0 : i32, i32
  }
  func.func @transform_6(%arg0: i32) -> (i32, i32) {
    %c0_i32 = arith.constant 0 : i32
    %c0_i32_0 = arith.constant 0 : i32
    %c0_i32_1 = arith.constant 0 : i32
    return %c0_i32, %c0_i32_0 : i32, i32
  }
  func.func @transform_7(%arg0: i32) -> (i32, i32) {
    %c0_i32 = arith.constant 0 : i32
    %c0_i32_0 = arith.constant 0 : i32
    %c0_i32_1 = arith.constant 0 : i32
    return %c0_i32, %c0_i32_0 : i32, i32
  }
  func.func @transform_8(%arg0: i32) -> (i32, i32) {
    %c0_i32 = arith.constant 0 : i32
    %c0_i32_0 = arith.constant 0 : i32
    %c0_i32_1 = arith.constant 0 : i32
    return %c0_i32, %c0_i32_0 : i32, i32
  }
  func.func @transform_9(%arg0: i32) -> (i32, i32) {
    %c0_i32 = arith.constant 0 : i32
    %c0_i32_0 = arith.constant 0 : i32
    return %arg0, %c0_i32 : i32, i32
  }
}

</mosaic_0001>

<bundles_post_ra>
// kernel: decoder_forward_packed.1
= control target key start
LH: loop header
LB: loop body
LE: loop exit
PB: predicated region body
PF: predicated region fallthrough
CT: control target
= control target key end

     0   :  { %vm235_vm0 = vcmask 523264   ;;  %vm1356_vm1 = vcmask 1045504   ;;  %vm1357_vm2 = vcmask 1046528   ;;  %v3233_v33 = vmov 65535   ;;  %s3234_s29 = smov 64   ;;  %s3986_s1 = inlined_call_operand.vmem [shape: bf16[64,128], index: 1, kind: input, shape index: {}]   ;;  %s3987_s0 = inlined_call_operand.vmem [shape: bf16[384,64], index: 0, kind: input, shape index: {}]   ;;  %s3988_s3 = inlined_call_operand.vmem [shape: bf16[64,45], index: 3, kind: input, shape index: {}]   ;;  %s3989_s5 = inlined_call_operand.vmem [shape: bf16[45,64], index: 5, kind: input, shape index: {}]   ;;  %s3990_s2 = inlined_call_operand.vmem [shape: f32[1,64], index: 2, kind: input, shape index: {}]   ;;  %s3991_s7 = inlined_call_operand.vmem [shape: bf16[64,1], index: 7, kind: input, shape index: {}]   ;;  %s3992_s4 = inlined_call_operand.vmem [shape: f32[1,45], index: 4, kind: input, shape index: {}]   ;;  %s3993_s8 = inlined_call_operand.<no memory space> [shape: f32[1,1], index: 8, kind: input, shape index: {}]   ;;  %s3994_s6 = inlined_call_operand.vmem [shape: f32[1,64], index: 6, kind: input, shape index: {}]   ;;  %s3995_s9 = inlined_call_operand.vmem [shape: f32[3,128], index: 9, kind: output, shape index: {}]  }
   0x1   :  { %v3098_v0 = vld [vmem:[%s3986_s1 + $0x18] sm:$0xff]   ;;  %v3099_v1 = vld [vmem:[%s3986_s1 + $0x10] sm:$0xff]   ;;  %v3100_v2 = vld [vmem:[%s3986_s1 + $0x8] sm:$0xff]   ;;  %v1358_v34 = vsel %vm1356_vm1, 4294967295, %v3233_v33  ;;  %vm1283_vm3 = vcmask 367616   ;;  %vm2353_vm4 = vcmask 130112  }
   0x2   :  { %2871 = vmatprep.subr.bf16.mxu0 %v3098_v0  ;;  %v3102_v3 = vld [vmem:[%s3987_s0] sm:$0xff]   ;;  %v3103_v5 = vld [vmem:[%s3987_s0 + $0x8] sm:$0xff]   ;;  %v3104_v6 = vld [vmem:[%s3987_s0 + $0x10] sm:$0xff]   ;;  %v1359_v35 = vsel %vm1357_vm2, %v1358_v34, 0  ;;  %vm2360_vm5 = vcmask 195712   ;;  %vm2367_vm6 = vcmask 261312  }
   0x3   :  { %2872 = vmatpush3.bf16.msra.mxu0 %v3098_v0  ;;  %2879 = vmatprep.mubr.msk.bf16.mxu0 %vm235_vm0, %v3102_v3  ;;  %v3101_v4 = vld [vmem:[%s3986_s1] sm:$0xff]   ;;  %v3105_v7 = vld [vmem:[%s3987_s0 + $0x18] sm:$0xff]   ;;  %v3107_v9 = vld [vmem:[%s3987_s0 + $0x28] sm:$0xff]   ;;  %vm2374_vm7 = vcmask 326912   ;;  %vm2381_vm8 = vcmask 392512   ;;  %vm2388_vm9 = vcmask 458112  }
   0x4   :  { %2873 = vmatprep.subr.bf16.mxu0 %v3099_v1  ;;  %v3106_v8 = vld [vmem:[%s3987_s0 + $0x20] sm:$0xff]   ;;  %v3126_v10 = vld [vmem:[%s3988_s3 + $0x18] sm:$0xff]   ;;  %v3108_v11 = vld [vmem:[%s3987_s0 + $0x30] sm:$0xff]   ;;  %vm2395_vm10 = vcmask 523712   ;;  %vm2402_vm11 = vcmask 589312   ;;  %vm2409_vm12 = vcmask 654912  }
   0x5   :  { %2927 = vmatprep.subr.bf16.mxu1 %v3126_v10  ;;  %v3109_v12 = vld [vmem:[%s3987_s0 + $0x38] sm:$0xff]   ;;  %v3110_v13 = vld [vmem:[%s3987_s0 + $0x40] sm:$0xff]   ;;  %v3111_v14 = vld [vmem:[%s3987_s0 + $0x48] sm:$0xff]   ;;  %vm2416_vm13 = vcmask 720512   ;;  %vm2423_vm14 = vcmask 786112   ;;  %vm2430_vm15 = vcmask 851712  }
   0x6   :  { %2928 = vmatpush3.bf16.msra.mxu1 %v3126_v10  ;;  %v3112_v15 = vld [vmem:[%s3987_s0 + $0x50] sm:$0xff]   ;;  %v3113_v16 = vld [vmem:[%s3987_s0 + $0x58] sm:$0xff]   ;;  %v3114_v17 = vld [vmem:[%s3987_s0 + $0x60] sm:$0xff]   ;;  %vm2444_vm1 = vcmask 982912   ;;  %vm2451_vm2 = vcmask 1048512  }
   0x7   :  { %2874 = vmatpush3.bf16.msra.mxu0 %v3099_v1  ;;  %v3115_v18 = vld [vmem:[%s3987_s0 + $0x68] sm:$0xff]   ;;  %v3116_v19 = vld [vmem:[%s3987_s0 + $0x70] sm:$0xff]   ;;  %v3117_v20 = vld [vmem:[%s3987_s0 + $0x78] sm:$0xff]  }
   0x8   :  { %2875 = vmatprep.subr.bf16.mxu0 %v3100_v2  ;;  %v3118_v21 = vld [vmem:[%s3987_s0 + $0x80] sm:$0xff]   ;;  %v3119_v22 = vld [vmem:[%s3987_s0 + $0x88] sm:$0xff]   ;;  %v3120_v23 = vld [vmem:[%s3987_s0 + $0x90] sm:$0xff]  }
   0x9   :  { %v3127_v24 = vld [vmem:[%s3988_s3 + $0x10] sm:$0xff]   ;;  %v3121_v25 = vld [vmem:[%s3987_s0 + $0x98] sm:$0xff]   ;;  %v3128_v26 = vld [vmem:[%s3988_s3 + $0x8] sm:$0xff]  }
   0xa   :  { %2929 = vmatprep.subr.bf16.mxu1 %v3127_v24  ;;  %v3122_v27 = vld [vmem:[%s3987_s0 + $0xa0] sm:$0xff]   ;;  %v3123_v29 = vld [vmem:[%s3987_s0 + $0xa8] sm:$0xff]   ;;  %v3124_v30 = vld [vmem:[%s3987_s0 + $0xb0] sm:$0xff]  }
   0xb   :  { %2876 = vmatpush3.bf16.msra.mxu0 %v3100_v2  ;;  %2930 = vmatpush3.bf16.msra.mxu1 %v3127_v24  ;;  %v3129_v28 = vld [vmem:[%s3988_s3] sm:$0xff]   ;;  %v3125_v31 = vld [vmem:[%s3987_s0 + $0xb8] sm:$0xff]   ;;  %v3130_v32 = vld [vmem:[%s3989_s5 + $0x10] sm:$0x7f]  }
   0xc   :  { %2877 = vmatprep.subr.bf16.mxu0 %v3101_v4  ;;  %2931 = vmatprep.subr.bf16.mxu1 %v3128_v26  ;;  %v1361_v36 = vand.u32 %v3130_v32, %v1359_v35  ;;  %v3413_v39 = vld [vmem:[%s3990_s2] ss:$0 sm:$0xff] }
   0xf   :  { %2878 = vmatpush3.bf16.msra.mxu0 %v3101_v4  ;;  %2932 = vmatpush3.bf16.msra.mxu1 %v3128_v26 }
  0x10   :  { %2933 = vmatprep.subr.bf16.mxu1 %v3129_v28  ;;  %2983 = vmatprep.subr.bf16.mxu0 %v1361_v36 }
  0x12   :  { %2880 = vmatmul.mubr.msk.bf16.vlgmr.msra.gmra.mxu0 %vm235_vm0, %v3103_v5 }
  0x13   :  { %2883 = vmatprep.mubr.msk.bf16.mxu0 %vm235_vm0, %v3104_v6  ;;  %2934 = vmatpush3.bf16.msra.mxu1 %v3129_v28 }
  0x14   :  { %2984 = vmatpush3.bf16.msra.mxu0 %v1361_v36 }
  0x1a   :  { %2884 = vmatmul.mubr.msk.bf16.gmra.mxu0 %vm235_vm0, %v3105_v7 }
  0x1b   :  { %2887 = vmatprep.mubr.msk.bf16.mxu0 %vm235_vm0, %v3106_v8 }
  0x22   :  { %2888 = vmatmul.mubr.msk.bf16.gmra.mxu0 %vm235_vm0, %v3107_v9 }
  0x23   :  { %2891 = vmatprep.mubr.msk.bf16.mxu0 %vm235_vm0, %v3108_v11 }
  0x2a   :  { %2892 = vmatmul.mubr.msk.bf16.gmra.mxu0 %vm235_vm0, %v3109_v12 }
  0x2b   :  { %2895 = vmatprep.mubr.msk.bf16.mxu0 %vm235_vm0, %v3110_v13 }
  0x32   :  { %2896 = vmatmul.mubr.msk.bf16.gmra.mxu0 %vm235_vm0, %v3111_v14  ;;  %v3131_v14 = vld [vmem:[%s3989_s5 + $0x8] sm:$0xff]  }
  0x33   :  { %2899 = vmatprep.mubr.msk.bf16.mxu0 %vm235_vm0, %v3112_v15  ;;  %2985 = vmatprep.subr.bf16.mxu0 %v3131_v14 }
  0x34   :  { %2986 = vmatpush3.bf16.msra.mxu0 %v3131_v14 }
  0x3a   :  { %2900 = vmatmul.mubr.msk.bf16.gmra.mxu0 %vm235_vm0, %v3113_v16 }
  0x3b   :  { %2903 = vmatprep.mubr.msk.bf16.mxu0 %vm235_vm0, %v3114_v17 }
  0x42   :  { %2904 = vmatmul.mubr.msk.bf16.gmra.mxu0 %vm235_vm0, %v3115_v18 }
  0x43   :  { %2907 = vmatprep.mubr.msk.bf16.mxu0 %vm235_vm0, %v3116_v19 }
  0x4a   :  { %2908 = vmatmul.mubr.msk.bf16.gmra.mxu0 %vm235_vm0, %v3117_v20 }
  0x4b   :  { %2911 = vmatprep.mubr.msk.bf16.mxu0 %vm235_vm0, %v3118_v21 }
  0x52   :  { %2912 = vmatmul.mubr.msk.bf16.gmra.mxu0 %vm235_vm0, %v3119_v22 }
  0x53   :  { %2915 = vmatprep.mubr.msk.bf16.mxu0 %vm235_vm0, %v3120_v23 }
  0x5a   :  { %2916 = vmatmul.mubr.msk.bf16.gmra.mxu0 %vm235_vm0, %v3121_v25 }
  0x5b   :  { %2919 = vmatprep.mubr.msk.bf16.mxu0 %vm235_vm0, %v3122_v27 }
  0x62   :  { %2920 = vmatmul.mubr.msk.bf16.gmra.mxu0 %vm235_vm0, %v3123_v29 }
  0x63   :  { %2923 = vmatprep.mubr.msk.bf16.mxu0 %vm235_vm0, %v3124_v30 }
  0x6a   :  { %2924 = vmatmul.mubr.msk.bf16.gmra.mxu0 %vm235_vm0, %v3125_v31 }
  0xd2   :  { %v2881_v37 = vpop.f32.mrf.mxu0 }
  0xd3   :  { %1143 = vrot.lane.b32.xlu1 %v2881_v37, %s3234_s29  ;;  %v542_v43 = vadd.f32 %v2881_v37, %v3413_v39 }
  0xd4   :  { %v342_v38 = vpop.f32.mrf.mxu0 }
  0xd5   :  { %1139 = vrot.lane.b32.xlu0 %v342_v38, %s3234_s29  ;;  %v540_v41 = vadd.f32 %v3413_v39, %v342_v38  ;;  %v590_v50 = vmax.f32 %v542_v43, 0.0 }
  0xd6   :  { %v2882_v40 = vpop.f32.mrf.mxu0 }
  0xd7   :  { %v543_v42 = vadd.f32 %v2882_v40, %v3413_v39  ;;  %1145 = vrot.lane.b32.xlu1 %v2882_v40, %s3234_s29  ;;  %v588_v48 = vmax.f32 %v540_v41, 0.0 }
  0xd8   :  { %v345_v44 = vpop.f32.mrf.mxu0 }
  0xd9   :  { %v541_v45 = vadd.f32 %v3413_v39, %v345_v44  ;;  %1141 = vrot.lane.b32.xlu0 %v345_v44, %s3234_s29  ;;  %v591_v46 = vmax.f32 %v543_v42, 0.0 }
  0xda   :  { %v2885_v47 = vpop.f32.mrf.mxu0 }
  0xdb   :  { %v589_v49 = vmax.f32 %v541_v45, 0.0  ;;  %v637_v53 = vpack.c.bf16 %v591_v46, %v590_v50  ;;  %v546_v57 = vadd.f32 %v2885_v47, %v3413_v39 }
  0xdc   :  { %v358_v51 = vpop.f32.mrf.mxu0 }
  0xdd   :  { %1147 = vrot.lane.b32.xlu0 %v358_v51, %s3234_s29  ;;  %v636_v52 = vpack.c.bf16 %v589_v49, %v588_v48  ;;  %v544_v55 = vadd.f32 %v3413_v39, %v358_v51  ;;  %v594_v0 = vmax.f32 %v546_v57, 0.0 }
  0xde   :  { %v2886_v54 = vpop.f32.mrf.mxu0 }
  0xdf   :  { %v547_v56 = vadd.f32 %v2886_v54, %v3413_v39  ;;  %2935 = vmatprep.mubr.msk.bf16.mxu1 %vm235_vm0, %v636_v52  ;;  %v592_v62 = vmax.f32 %v544_v55, 0.0 }
  0xe0   :  { %v361_v58 = vpop.f32.mrf.mxu0  ;;  %2936 = vmatmul.mubr.msk.bf16.vlgmr.msra.gmra.mxu1 %vm235_vm0, %v637_v53 }
  0xe1   :  { %v545_v59 = vadd.f32 %v3413_v39, %v361_v58  ;;  %1151 = vrot.lane.b32.xlu0 %v2885_v47, %s3234_s29  ;;  %1149 = vrot.lane.b32.xlu1 %v361_v58, %s3234_s29  ;;  %v595_v60 = vmax.f32 %v547_v56, 0.0 }
  0xe2   :  { %v2889_v61 = vpop.f32.mrf.mxu0 }
  0xe3   :  { %v593_v63 = vmax.f32 %v545_v59, 0.0  ;;  %v639_v3 = vpack.c.bf16 %v595_v60, %v594_v0  ;;  %v550_v7 = vadd.f32 %v2889_v61, %v3413_v39 }
  0xe4   :  { %v374_v1 = vpop.f32.mrf.mxu0 }
  0xe5   :  { %v638_v2 = vpack.c.bf16 %v593_v63, %v592_v62  ;;  %1153 = vrot.lane.b32.xlu1 %v2886_v54, %s3234_s29  ;;  %1155 = vrot.lane.b32.xlu0 %v374_v1, %s3234_s29  ;;  %v548_v5 = vadd.f32 %v3413_v39, %v374_v1  ;;  %v598_v15 = vmax.f32 %v550_v7, 0.0 }
  0xe6   :  { %v2890_v4 = vpop.f32.mrf.mxu0 }
  0xe7   :  { %v551_v6 = vadd.f32 %v2890_v4, %v3413_v39  ;;  %2939 = vmatprep.mubr.msk.bf16.mxu1 %vm235_vm0, %v638_v2  ;;  %v596_v12 = vmax.f32 %v548_v5, 0.0 }
  0xe8   :  { %v377_v8 = vpop.f32.mrf.mxu0  ;;  %2940 = vmatmul.mubr.msk.bf16.gmra.mxu1 %vm235_vm0, %v639_v3 }
  0xe9   :  { %v549_v9 = vadd.f32 %v3413_v39, %v377_v8  ;;  %1159 = vrot.lane.b32.xlu0 %v2889_v61, %s3234_s29  ;;  %1157 = vrot.lane.b32.xlu1 %v377_v8, %s3234_s29  ;;  %v599_v10 = vmax.f32 %v551_v6, 0.0  ;;  %v3132_v8 = vld [vmem:[%s3989_s5] sm:$0xff]  }
  0xea   :  { %v2893_v11 = vpop.f32.mrf.mxu0  ;;  %2987 = vmatprep.subr.bf16.mxu0 %v3132_v8 }
  0xeb   :  { %v597_v13 = vmax.f32 %v549_v9, 0.0  ;;  %v641_v18 = vpack.c.bf16 %v599_v10, %v598_v15  ;;  %v554_v22 = vadd.f32 %v2893_v11, %v3413_v39  ;;  %2988 = vmatpush3.bf16.msra.mxu0 %v3132_v8 }
  0xec   :  { %v390_v16 = vpop.f32.mrf.mxu0 }
  0xed   :  { %v640_v17 = vpack.c.bf16 %v597_v13, %v596_v12  ;;  %1161 = vrot.lane.b32.xlu1 %v2890_v4, %s3234_s29  ;;  %1163 = vrot.lane.b32.xlu0 %v390_v16, %s3234_s29  ;;  %v552_v20 = vadd.f32 %v3413_v39, %v390_v16  ;;  %v602_v29 = vmax.f32 %v554_v22, 0.0 }
  0xee   :  { %v2894_v19 = vpop.f32.mrf.mxu0 }
  0xef   :  { %v555_v21 = vadd.f32 %v2894_v19, %v3413_v39  ;;  %2943 = vmatprep.mubr.msk.bf16.mxu1 %vm235_vm0, %v640_v17  ;;  %v600_v27 = vmax.f32 %v552_v20, 0.0 }
  0xf0   :  { %v393_v23 = vpop.f32.mrf.mxu0  ;;  %2944 = vmatmul.mubr.msk.bf16.gmra.mxu1 %vm235_vm0, %v641_v18 }
  0xf1   :  { %v553_v24 = vadd.f32 %v3413_v39, %v393_v23  ;;  %1167 = vrot.lane.b32.xlu0 %v2893_v11, %s3234_s29  ;;  %1165 = vrot.lane.b32.xlu1 %v393_v23, %s3234_s29  ;;  %v603_v25 = vmax.f32 %v555_v21, 0.0 }
  0xf2   :  { %v2897_v26 = vpop.f32.mrf.mxu0 }
  0xf3   :  { %v601_v28 = vmax.f32 %v553_v24, 0.0  ;;  %v643_v32 = vpack.c.bf16 %v603_v25, %v602_v29  ;;  %v558_v36 = vadd.f32 %v2897_v26, %v3413_v39 }
  0xf4   :  { %v406_v30 = vpop.f32.mrf.mxu0 }
  0xf5   :  { %v642_v31 = vpack.c.bf16 %v601_v28, %v600_v27  ;;  %1169 = vrot.lane.b32.xlu1 %v2894_v19, %s3234_s29  ;;  %1171 = vrot.lane.b32.xlu0 %v406_v30, %s3234_s29  ;;  %v556_v34 = vadd.f32 %v3413_v39, %v406_v30  ;;  %v606_v44 = vmax.f32 %v558_v36, 0.0 }
  0xf6   :  { %v2898_v33 = vpop.f32.mrf.mxu0 }
  0xf7   :  { %v559_v35 = vadd.f32 %v2898_v33, %v3413_v39  ;;  %2947 = vmatprep.mubr.msk.bf16.mxu1 %vm235_vm0, %v642_v31  ;;  %v604_v42 = vmax.f32 %v556_v34, 0.0 }
  0xf8   :  { %v409_v37 = vpop.f32.mrf.mxu0  ;;  %2948 = vmatmul.mubr.msk.bf16.gmra.mxu1 %vm235_vm0, %v643_v32 }
  0xf9   :  { %v557_v38 = vadd.f32 %v3413_v39, %v409_v37  ;;  %1175 = vrot.lane.b32.xlu0 %v2897_v26, %s3234_s29  ;;  %1173 = vrot.lane.b32.xlu1 %v409_v37, %s3234_s29  ;;  %v607_v40 = vmax.f32 %v559_v35, 0.0 }
  0xfa   :  { %v2901_v41 = vpop.f32.mrf.mxu0 }
  0xfb   :  { %v605_v43 = vmax.f32 %v557_v38, 0.0  ;;  %v645_v47 = vpack.c.bf16 %v607_v40, %v606_v44  ;;  %v562_v51 = vadd.f32 %v2901_v41, %v3413_v39 }
  0xfc   :  { %v422_v45 = vpop.f32.mrf.mxu0 }
  0xfd   :  { %v644_v46 = vpack.c.bf16 %v605_v43, %v604_v42  ;;  %1177 = vrot.lane.b32.xlu1 %v2898_v33, %s3234_s29  ;;  %1179 = vrot.lane.b32.xlu0 %v422_v45, %s3234_s29  ;;  %v560_v49 = vadd.f32 %v3413_v39, %v422_v45  ;;  %v610_v58 = vmax.f32 %v562_v51, 0.0 }
  0xfe   :  { %v2902_v48 = vpop.f32.mrf.mxu0 }
  0xff   :  { %v563_v50 = vadd.f32 %v2902_v48, %v3413_v39  ;;  %2951 = vmatprep.mubr.msk.bf16.mxu1 %vm235_vm0, %v644_v46  ;;  %v608_v56 = vmax.f32 %v560_v49, 0.0 }
 0x100   :  { %v425_v52 = vpop.f32.mrf.mxu0  ;;  %2952 = vmatmul.mubr.msk.bf16.gmra.mxu1 %vm235_vm0, %v645_v47 }
 0x101   :  { %v561_v53 = vadd.f32 %v3413_v39, %v425_v52  ;;  %1183 = vrot.lane.b32.xlu0 %v2901_v41, %s3234_s29  ;;  %1181 = vrot.lane.b32.xlu1 %v425_v52, %s3234_s29  ;;  %v611_v54 = vmax.f32 %v563_v50, 0.0 }
 0x102   :  { %v2905_v55 = vpop.f32.mrf.mxu0 }
 0x103   :  { %v609_v57 = vmax.f32 %v561_v53, 0.0  ;;  %v647_v61 = vpack.c.bf16 %v611_v54, %v610_v58  ;;  %v566_v1 = vadd.f32 %v2905_v55, %v3413_v39 }
 0x104   :  { %v438_v59 = vpop.f32.mrf.mxu0 }
 0x105   :  { %v646_v60 = vpack.c.bf16 %v609_v57, %v608_v56  ;;  %1185 = vrot.lane.b32.xlu1 %v2902_v48, %s3234_s29  ;;  %1187 = vrot.lane.b32.xlu0 %v438_v59, %s3234_s29  ;;  %v564_v63 = vadd.f32 %v3413_v39, %v438_v59  ;;  %v614_v9 = vmax.f32 %v566_v1, 0.0 }
 0x106   :  { %v2906_v62 = vpop.f32.mrf.mxu0 }
 0x107   :  { %v567_v0 = vadd.f32 %v2906_v62, %v3413_v39  ;;  %2955 = vmatprep.mubr.msk.bf16.mxu1 %vm235_vm0, %v646_v60  ;;  %v612_v6 = vmax.f32 %v564_v63, 0.0 }
 0x108   :  { %v441_v2 = vpop.f32.mrf.mxu0  ;;  %2956 = vmatmul.mubr.msk.bf16.gmra.mxu1 %vm235_vm0, %v647_v61 }
 0x109   :  { %v565_v3 = vadd.f32 %v3413_v39, %v441_v2  ;;  %1191 = vrot.lane.b32.xlu0 %v2905_v55, %s3234_s29  ;;  %1189 = vrot.lane.b32.xlu1 %v441_v2, %s3234_s29  ;;  %v615_v4 = vmax.f32 %v567_v0, 0.0 }
 0x10a   :  { %v2909_v5 = vpop.f32.mrf.mxu0 }
 0x10b   :  { %v613_v7 = vmax.f32 %v565_v3, 0.0  ;;  %v649_v12 = vpack.c.bf16 %v615_v4, %v614_v9  ;;  %v570_v16 = vadd.f32 %v2909_v5, %v3413_v39 }
 0x10c   :  { %v454_v10 = vpop.f32.mrf.mxu0 }
 0x10d   :  { %v648_v11 = vpack.c.bf16 %v613_v7, %v612_v6  ;;  %1193 = vrot.lane.b32.xlu1 %v2906_v62, %s3234_s29  ;;  %1195 = vrot.lane.b32.xlu0 %v454_v10, %s3234_s29  ;;  %v568_v14 = vadd.f32 %v3413_v39, %v454_v10  ;;  %v618_v23 = vmax.f32 %v570_v16, 0.0 }
 0x10e   :  { %v2910_v13 = vpop.f32.mrf.mxu0 }
 0x10f   :  { %v571_v15 = vadd.f32 %v2910_v13, %v3413_v39  ;;  %2959 = vmatprep.mubr.msk.bf16.mxu1 %vm235_vm0, %v648_v11  ;;  %v616_v21 = vmax.f32 %v568_v14, 0.0 }
 0x110   :  { %v457_v17 = vpop.f32.mrf.mxu0  ;;  %2960 = vmatmul.mubr.msk.bf16.gmra.mxu1 %vm235_vm0, %v649_v12 }
 0x111   :  { %v569_v18 = vadd.f32 %v3413_v39, %v457_v17  ;;  %1199 = vrot.lane.b32.xlu0 %v2909_v5, %s3234_s29  ;;  %1197 = vrot.lane.b32.xlu1 %v457_v17, %s3234_s29  ;;  %v619_v19 = vmax.f32 %v571_v15, 0.0 }
 0x112   :  { %v2913_v20 = vpop.f32.mrf.mxu0 }
 0x113   :  { %v617_v22 = vmax.f32 %v569_v18, 0.0  ;;  %v651_v26 = vpack.c.bf16 %v619_v19, %v618_v23  ;;  %v574_v30 = vadd.f32 %v2913_v20, %v3413_v39  ;;  %v3134_v18 = vld [vmem:[%s3991_s7 + $0x10] sm:$0xff]   ;;  %v3135_v19 = vld [vmem:[%s3991_s7 + $0x8] sm:$0xff]   ;;  %v3555_v23 = vld [vmem:[%s3992_s4] ss:$0 sm:$0xff] }
 0x114   :  { %v470_v24 = vpop.f32.mrf.mxu0 }
 0x115   :  { %v650_v25 = vpack.c.bf16 %v617_v22, %v616_v21  ;;  %1201 = vrot.lane.b32.xlu1 %v2910_v13, %s3234_s29  ;;  %1203 = vrot.lane.b32.xlu0 %v470_v24, %s3234_s29  ;;  %v572_v28 = vadd.f32 %v3413_v39, %v470_v24  ;;  %v622_v37 = vmax.f32 %v574_v30, 0.0 }
 0x116   :  { %v2914_v27 = vpop.f32.mrf.mxu0 }
 0x117   :  { %v575_v29 = vadd.f32 %v2914_v27, %v3413_v39  ;;  %2963 = vmatprep.mubr.msk.bf16.mxu1 %vm235_vm0, %v650_v25  ;;  %v620_v35 = vmax.f32 %v572_v28, 0.0 }
 0x118   :  { %v473_v31 = vpop.f32.mrf.mxu0  ;;  %2964 = vmatmul.mubr.msk.bf16.gmra.mxu1 %vm235_vm0, %v651_v26 }
 0x119   :  { %v573_v32 = vadd.f32 %v3413_v39, %v473_v31  ;;  %1207 = vrot.lane.b32.xlu0 %v2913_v20, %s3234_s29  ;;  %1205 = vrot.lane.b32.xlu1 %v473_v31, %s3234_s29  ;;  %v623_v33 = vmax.f32 %v575_v29, 0.0  ;;  %v3136_v20 = vld [vmem:[%s3991_s7] sm:$0xff]  }
 0x11a   :  { %v2917_v34 = vpop.f32.mrf.mxu0 }
 0x11b   :  { %v621_v36 = vmax.f32 %v573_v32, 0.0  ;;  %v653_v41 = vpack.c.bf16 %v623_v33, %v622_v37  ;;  %v578_v45 = vadd.f32 %v2917_v34, %v3413_v39 }
 0x11c   :  { %v486_v38 = vpop.f32.mrf.mxu0 }
 0x11d   :  { %v652_v40 = vpack.c.bf16 %v621_v36, %v620_v35  ;;  %1209 = vrot.lane.b32.xlu1 %v2914_v27, %s3234_s29  ;;  %1211 = vrot.lane.b32.xlu0 %v486_v38, %s3234_s29  ;;  %v576_v43 = vadd.f32 %v3413_v39, %v486_v38  ;;  %v626_v52 = vmax.f32 %v578_v45, 0.0 }
 0x11e   :  { %v2918_v42 = vpop.f32.mrf.mxu0 }
 0x11f   :  { %v579_v44 = vadd.f32 %v2918_v42, %v3413_v39  ;;  %2967 = vmatprep.mubr.msk.bf16.mxu1 %vm235_vm0, %v652_v40  ;;  %v624_v50 = vmax.f32 %v576_v43, 0.0 }
 0x120   :  { %v489_v46 = vpop.f32.mrf.mxu0  ;;  %2968 = vmatmul.mubr.msk.bf16.gmra.mxu1 %vm235_vm0, %v653_v41 }
 0x121   :  { %v577_v47 = vadd.f32 %v3413_v39, %v489_v46  ;;  %1215 = vrot.lane.b32.xlu0 %v2917_v34, %s3234_s29  ;;  %1213 = vrot.lane.b32.xlu1 %v489_v46, %s3234_s29  ;;  %v627_v48 = vmax.f32 %v579_v44, 0.0 }
 0x122   :  { %v2921_v49 = vpop.f32.mrf.mxu0 }
 0x123   :  { %v625_v51 = vmax.f32 %v577_v47, 0.0  ;;  %v655_v55 = vpack.c.bf16 %v627_v48, %v626_v52  ;;  %v582_v59 = vadd.f32 %v2921_v49, %v3413_v39 }
 0x124   :  { %v502_v53 = vpop.f32.mrf.mxu0 }
 0x125   :  { %v654_v54 = vpack.c.bf16 %v625_v51, %v624_v50  ;;  %1217 = vrot.lane.b32.xlu1 %v2918_v42, %s3234_s29  ;;  %1219 = vrot.lane.b32.xlu0 %v502_v53, %s3234_s29  ;;  %v580_v57 = vadd.f32 %v3413_v39, %v502_v53  ;;  %v630_v2 = vmax.f32 %v582_v59, 0.0 }
 0x126   :  { %v2922_v56 = vpop.f32.mrf.mxu0 }
 0x127   :  { %v583_v58 = vadd.f32 %v2922_v56, %v3413_v39  ;;  %2971 = vmatprep.mubr.msk.bf16.mxu1 %vm235_vm0, %v654_v54  ;;  %v628_v0 = vmax.f32 %v580_v57, 0.0 }
 0x128   :  { %v505_v60 = vpop.f32.mrf.mxu0  ;;  %2972 = vmatmul.mubr.msk.bf16.gmra.mxu1 %vm235_vm0, %v655_v55 }
 0x129   :  { %v581_v61 = vadd.f32 %v3413_v39, %v505_v60  ;;  %1223 = vrot.lane.b32.xlu0 %v2921_v49, %s3234_s29  ;;  %1221 = vrot.lane.b32.xlu1 %v505_v60, %s3234_s29  ;;  %v631_v62 = vmax.f32 %v583_v58, 0.0 }
 0x12a   :  { %v2925_v63 = vpop.f32.mrf.mxu0 }
 0x12b   :  { %v629_v1 = vmax.f32 %v581_v61, 0.0  ;;  %v657_v5 = vpack.c.bf16 %v631_v62, %v630_v2  ;;  %v586_v9 = vadd.f32 %v2925_v63, %v3413_v39 }
 0x12c   :  { %v518_v3 = vpop.f32.mrf.mxu0 }
 0x12d   :  { %v656_v4 = vpack.c.bf16 %v629_v1, %v628_v0  ;;  %1225 = vrot.lane.b32.xlu1 %v2922_v56, %s3234_s29  ;;  %1227 = vrot.lane.b32.xlu0 %v518_v3, %s3234_s29  ;;  %v584_v7 = vadd.f32 %v3413_v39, %v518_v3  ;;  %v634_v15 = vmax.f32 %v586_v9, 0.0 }
 0x12e   :  { %v2926_v6 = vpop.f32.mrf.mxu0 }
 0x12f   :  { %v587_v8 = vadd.f32 %v2926_v6, %v3413_v39  ;;  %2975 = vmatprep.mubr.msk.bf16.mxu1 %vm235_vm0, %v656_v4  ;;  %v632_v13 = vmax.f32 %v584_v7, 0.0 }
 0x130   :  { %v521_v10 = vpop.f32.mrf.mxu0  ;;  %2976 = vmatmul.mubr.msk.bf16.gmra.mxu1 %vm235_vm0, %v657_v5 }
 0x131   :  { %v585_v11 = vadd.f32 %v3413_v39, %v521_v10  ;;  %1231 = vrot.lane.b32.xlu0 %v2925_v63, %s3234_s29  ;;  %1229 = vrot.lane.b32.xlu1 %v521_v10, %s3234_s29  ;;  %v635_v12 = vmax.f32 %v587_v8, 0.0  ;;  %v3133_v39 = vld [vmem:[%s3991_s7 + $0x18] sm:$0xff]  }
 0x132   :  { %3037 = vmatprep.subr.bf16.mxu1 %v3133_v39 }
 0x133   :  { %v633_v14 = vmax.f32 %v585_v11, 0.0  ;;  %v659_v17 = vpack.c.bf16 %v635_v12, %v634_v15  ;;  %3038 = vmatpush3.bf16.msra.mxu1 %v3133_v39 }
 0x134   :  { %3039 = vmatprep.subr.bf16.mxu1 %v3134_v18 }
 0x135   :  { %v658_v16 = vpack.c.bf16 %v633_v14, %v632_v13  ;;  %1233 = vrot.lane.b32.xlu1 %v2926_v6, %s3234_s29 }
 0x137   :  { %2979 = vmatprep.mubr.msk.bf16.mxu1 %vm235_vm0, %v658_v16  ;;  %3040 = vmatpush3.bf16.msra.mxu1 %v3134_v18 }
 0x138   :  { %2980 = vmatmul.mubr.msk.bf16.gmra.mxu1 %vm235_vm0, %v659_v17  ;;  %3041 = vmatprep.subr.bf16.mxu1 %v3135_v19 }
 0x13b   :  { %3042 = vmatpush3.bf16.msra.mxu1 %v3135_v19 }
 0x13c   :  { %3043 = vmatprep.subr.bf16.mxu1 %v3136_v20 }
 0x13f   :  { %3044 = vmatpush3.bf16.msra.mxu1 %v3136_v20 }
 0x1a0   :  { %v2937_v21 = vpop.f32.mrf.mxu1 }
 0x1a1   :  { %v814_v27 = vadd.f32 %v2937_v21, %v3555_v23 }
 0x1a2   :  { %v805_v22 = vpop.f32.mrf.mxu1 }
 0x1a3   :  { %v806_v25 = vadd.f32 %v3555_v23, %v805_v22  ;;  %v998_v34 = vmax.f32 %v814_v27, 0.0 }
 0x1a4   :  { %v2938_v24 = vpop.f32.mrf.mxu1 }
 0x1a5   :  { %v817_v26 = vadd.f32 %v2938_v24, %v3555_v23  ;;  %v996_v32 = vmax.f32 %v806_v25, 0.0 }
 0x1a6   :  { %v808_v28 = vpop.f32.mrf.mxu1 }
 0x1a7   :  { %v809_v29 = vadd.f32 %v3555_v23, %v808_v28  ;;  %v999_v30 = vmax.f32 %v817_v26, 0.0 }
 0x1a8   :  { %v2941_v31 = vpop.f32.mrf.mxu1 }
 0x1a9   :  { %v997_v33 = vmax.f32 %v809_v29, 0.0  ;;  %v1045_v37 = vpack.c.bf16 %v999_v30, %v998_v34  ;;  %v830_v42 = vadd.f32 %v2941_v31, %v3555_v23 }
 0x1aa   :  { %v821_v35 = vpop.f32.mrf.mxu1 }
 0x1ab   :  { %v1044_v36 = vpack.c.bf16 %v997_v33, %v996_v32  ;;  %v822_v40 = vadd.f32 %v3555_v23, %v821_v35  ;;  %v1002_v49 = vmax.f32 %v830_v42, 0.0 }
 0x1ac   :  { %v2942_v38 = vpop.f32.mrf.mxu1 }
 0x1ad   :  { %v833_v41 = vadd.f32 %v2942_v38, %v3555_v23  ;;  %2989 = vmatprep.mubr.msk.bf16.mxu0 %vm1283_vm3, %v1044_v36  ;;  %v1000_v47 = vmax.f32 %v822_v40, 0.0 }
 0x1ae   :  { %v824_v43 = vpop.f32.mrf.mxu1  ;;  %2990 = vmatmul.mubr.msk.bf16.vlgmr.msra.gmra.mxu0 %vm1283_vm3, %v1045_v37 }
 0x1af   :  { %v825_v44 = vadd.f32 %v3555_v23, %v824_v43  ;;  %v1003_v45 = vmax.f32 %v833_v41, 0.0 }
 0x1b0   :  { %v2945_v46 = vpop.f32.mrf.mxu1 }
 0x1b1   :  { %v1001_v48 = vmax.f32 %v825_v44, 0.0  ;;  %v1047_v52 = vpack.c.bf16 %v1003_v45, %v1002_v49  ;;  %v846_v56 = vadd.f32 %v2945_v46, %v3555_v23 }
 0x1b2   :  { %v837_v50 = vpop.f32.mrf.mxu1 }
 0x1b3   :  { %v1046_v51 = vpack.c.bf16 %v1001_v48, %v1000_v47  ;;  %v838_v54 = vadd.f32 %v3555_v23, %v837_v50  ;;  %v1006_v63 = vmax.f32 %v846_v56, 0.0 }
 0x1b4   :  { %v2946_v53 = vpop.f32.mrf.mxu1 }
 0x1b5   :  { %v849_v55 = vadd.f32 %v2946_v53, %v3555_v23  ;;  %2993 = vmatprep.mubr.msk.bf16.mxu0 %vm1283_vm3, %v1046_v51  ;;  %v1004_v61 = vmax.f32 %v838_v54, 0.0 }
 0x1b6   :  { %v840_v57 = vpop.f32.mrf.mxu1  ;;  %2994 = vmatmul.mubr.msk.bf16.gmra.mxu0 %vm1283_vm3, %v1047_v52 }
 0x1b7   :  { %v841_v58 = vadd.f32 %v3555_v23, %v840_v57  ;;  %v1007_v59 = vmax.f32 %v849_v55, 0.0 }
 0x1b8   :  { %v2949_v60 = vpop.f32.mrf.mxu1 }
 0x1b9   :  { %v1005_v62 = vmax.f32 %v841_v58, 0.0  ;;  %v1049_v2 = vpack.c.bf16 %v1007_v59, %v1006_v63  ;;  %v862_v6 = vadd.f32 %v2949_v60, %v3555_v23 }
 0x1ba   :  { %v853_v0 = vpop.f32.mrf.mxu1 }
 0x1bb   :  { %v1048_v1 = vpack.c.bf16 %v1005_v62, %v1004_v61  ;;  %v854_v4 = vadd.f32 %v3555_v23, %v853_v0  ;;  %v1010_v13 = vmax.f32 %v862_v6, 0.0 }
 0x1bc   :  { %v2950_v3 = vpop.f32.mrf.mxu1 }
 0x1bd   :  { %v865_v5 = vadd.f32 %v2950_v3, %v3555_v23  ;;  %2997 = vmatprep.mubr.msk.bf16.mxu0 %vm1283_vm3, %v1048_v1  ;;  %v1008_v11 = vmax.f32 %v854_v4, 0.0 }
 0x1be   :  { %v856_v7 = vpop.f32.mrf.mxu1  ;;  %2998 = vmatmul.mubr.msk.bf16.gmra.mxu0 %vm1283_vm3, %v1049_v2 }
 0x1bf   :  { %v857_v8 = vadd.f32 %v3555_v23, %v856_v7  ;;  %v1011_v9 = vmax.f32 %v865_v5, 0.0 }
 0x1c0   :  { %v2953_v10 = vpop.f32.mrf.mxu1 }
 0x1c1   :  { %v1009_v12 = vmax.f32 %v857_v8, 0.0  ;;  %v1051_v16 = vpack.c.bf16 %v1011_v9, %v1010_v13  ;;  %v878_v19 = vadd.f32 %v2953_v10, %v3555_v23 }
 0x1c2   :  { %v869_v14 = vpop.f32.mrf.mxu1 }
 0x1c3   :  { %v1050_v15 = vpack.c.bf16 %v1009_v12, %v1008_v11  ;;  %v870_v39 = vadd.f32 %v3555_v23, %v869_v14  ;;  %v1014_v27 = vmax.f32 %v878_v19, 0.0 }
 0x1c4   :  { %v2954_v17 = vpop.f32.mrf.mxu1 }
 0x1c5   :  { %v881_v18 = vadd.f32 %v2954_v17, %v3555_v23  ;;  %3001 = vmatprep.mubr.msk.bf16.mxu0 %vm1283_vm3, %v1050_v15  ;;  %v1012_v25 = vmax.f32 %v870_v39, 0.0 }
 0x1c6   :  { %v872_v20 = vpop.f32.mrf.mxu1  ;;  %3002 = vmatmul.mubr.msk.bf16.gmra.mxu0 %vm1283_vm3, %v1051_v16 }
 0x1c7   :  { %v873_v21 = vadd.f32 %v3555_v23, %v872_v20  ;;  %v1015_v22 = vmax.f32 %v881_v18, 0.0 }
 0x1c8   :  { %v2957_v24 = vpop.f32.mrf.mxu1 }
 0x1c9   :  { %v1013_v26 = vmax.f32 %v873_v21, 0.0  ;;  %v1053_v30 = vpack.c.bf16 %v1015_v22, %v1014_v27  ;;  %v894_v34 = vadd.f32 %v2957_v24, %v3555_v23 }
 0x1ca   :  { %v885_v28 = vpop.f32.mrf.mxu1 }
 0x1cb   :  { %v1052_v29 = vpack.c.bf16 %v1013_v26, %v1012_v25  ;;  %v886_v32 = vadd.f32 %v3555_v23, %v885_v28  ;;  %v1018_v42 = vmax.f32 %v894_v34, 0.0 }
 0x1cc   :  { %v2958_v31 = vpop.f32.mrf.mxu1 }
 0x1cd   :  { %v897_v33 = vadd.f32 %v2958_v31, %v3555_v23  ;;  %3005 = vmatprep.mubr.msk.bf16.mxu0 %vm1283_vm3, %v1052_v29  ;;  %v1016_v40 = vmax.f32 %v886_v32, 0.0 }
 0x1ce   :  { %v888_v35 = vpop.f32.mrf.mxu1  ;;  %3006 = vmatmul.mubr.msk.bf16.gmra.mxu0 %vm1283_vm3, %v1053_v30 }
 0x1cf   :  { %v889_v36 = vadd.f32 %v3555_v23, %v888_v35  ;;  %v1019_v37 = vmax.f32 %v897_v33, 0.0 }
 0x1d0   :  { %v2961_v38 = vpop.f32.mrf.mxu1 }
 0x1d1   :  { %v1017_v41 = vmax.f32 %v889_v36, 0.0  ;;  %v1055_v45 = vpack.c.bf16 %v1019_v37, %v1018_v42  ;;  %v910_v49 = vadd.f32 %v2961_v38, %v3555_v23 }
 0x1d2   :  { %v901_v43 = vpop.f32.mrf.mxu1 }
 0x1d3   :  { %v1054_v44 = vpack.c.bf16 %v1017_v41, %v1016_v40  ;;  %v902_v47 = vadd.f32 %v3555_v23, %v901_v43  ;;  %v1022_v56 = vmax.f32 %v910_v49, 0.0 }
 0x1d4   :  { %v2962_v46 = vpop.f32.mrf.mxu1 }
 0x1d5   :  { %v913_v48 = vadd.f32 %v2962_v46, %v3555_v23  ;;  %3009 = vmatprep.mubr.msk.bf16.mxu0 %vm1283_vm3, %v1054_v44  ;;  %v1020_v54 = vmax.f32 %v902_v47, 0.0 }
 0x1d6   :  { %v904_v50 = vpop.f32.mrf.mxu1  ;;  %3010 = vmatmul.mubr.msk.bf16.gmra.mxu0 %vm1283_vm3, %v1055_v45 }
 0x1d7   :  { %v905_v51 = vadd.f32 %v3555_v23, %v904_v50  ;;  %v1023_v52 = vmax.f32 %v913_v48, 0.0 }
 0x1d8   :  { %v2965_v53 = vpop.f32.mrf.mxu1 }
 0x1d9   :  { %v1021_v55 = vmax.f32 %v905_v51, 0.0  ;;  %v1057_v59 = vpack.c.bf16 %v1023_v52, %v1022_v56  ;;  %v926_v63 = vadd.f32 %v2965_v53, %v3555_v23 }
 0x1da   :  { %v917_v57 = vpop.f32.mrf.mxu1 }
 0x1db   :  { %v1056_v58 = vpack.c.bf16 %v1021_v55, %v1020_v54  ;;  %v918_v61 = vadd.f32 %v3555_v23, %v917_v57  ;;  %v1026_v6 = vmax.f32 %v926_v63, 0.0 }
 0x1dc   :  { %v2966_v60 = vpop.f32.mrf.mxu1 }
 0x1dd   :  { %v929_v62 = vadd.f32 %v2966_v60, %v3555_v23  ;;  %3013 = vmatprep.mubr.msk.bf16.mxu0 %vm1283_vm3, %v1056_v58  ;;  %v1024_v4 = vmax.f32 %v918_v61, 0.0 }
 0x1de   :  { %v920_v0 = vpop.f32.mrf.mxu1  ;;  %3014 = vmatmul.mubr.msk.bf16.gmra.mxu0 %vm1283_vm3, %v1057_v59 }
 0x1df   :  { %v921_v1 = vadd.f32 %v3555_v23, %v920_v0  ;;  %v1027_v2 = vmax.f32 %v929_v62, 0.0 }
 0x1e0   :  { %v2969_v3 = vpop.f32.mrf.mxu1 }
 0x1e1   :  { %v1025_v5 = vmax.f32 %v921_v1, 0.0  ;;  %v1059_v9 = vpack.c.bf16 %v1027_v2, %v1026_v6  ;;  %v942_v13 = vadd.f32 %v2969_v3, %v3555_v23  ;;  %v14_v1 = vstv %s3993_s8  ;;  %v1140_v2 = vpop.permute.xlu0 %1139  ;;  %v1144_v3 = vpop.permute.xlu1 %1143 }
 0x1e2   :  { %v933_v7 = vpop.f32.mrf.mxu1  ;;  %15 = vst [vmem:[#allocation2] sm:$0x1] %v14_v1 }
 0x1e3   :  { %v1058_v8 = vpack.c.bf16 %v1025_v5, %v1024_v4  ;;  %v934_v11 = vadd.f32 %v3555_v23, %v933_v7  ;;  %v1030_v19 = vmax.f32 %v942_v13, 0.0  ;;  %v3235_v4 = vmov 0  }
 0x1e4   :  { %v2970_v10 = vpop.f32.mrf.mxu1  ;;  %3096 = vset.pattern.permute.xlu0 %v3235_v4  ;;  %3097 = vset.pattern.permute.xlu1 %v3235_v4 }
 0x1e5   :  { %v945_v12 = vadd.f32 %v2970_v10, %v3555_v23  ;;  %3017 = vmatprep.mubr.msk.bf16.mxu0 %vm1283_vm3, %v1058_v8  ;;  %v1028_v39 = vmax.f32 %v934_v11, 0.0  ;;  %v1142_v5 = vpop.permute.xlu0 %1141  ;;  %v1146_v6 = vpop.permute.xlu1 %1145 }
 0x1e6   :  { %v936_v14 = vpop.f32.mrf.mxu1  ;;  %3018 = vmatmul.mubr.msk.bf16.gmra.mxu0 %vm1283_vm3, %v1059_v9 }
 0x1e7   :  { %v937_v15 = vadd.f32 %v3555_v23, %v936_v14  ;;  %v1031_v16 = vmax.f32 %v945_v12, 0.0 }
 0x1e8   :  { %v2973_v17 = vpop.f32.mrf.mxu1 }
 0x1e9   :  { %v1029_v18 = vmax.f32 %v937_v15, 0.0  ;;  %v1061_v22 = vpack.c.bf16 %v1031_v16, %v1030_v19  ;;  %v958_v27 = vadd.f32 %v2973_v17, %v3555_v23  ;;  %v1148_v7 = vpop.permute.xlu0 %1147  ;;  %v1150_v8 = vpop.permute.xlu1 %1149 }
 0x1ea   :  { %v949_v20 = vpop.f32.mrf.mxu1 }
 0x1eb   :  { %v1060_v21 = vpack.c.bf16 %v1029_v18, %v1028_v39  ;;  %v950_v25 = vadd.f32 %v3555_v23, %v949_v20  ;;  %v1034_v34 = vmax.f32 %v958_v27, 0.0 }
 0x1ec   :  { %v2974_v24 = vpop.f32.mrf.mxu1 }
 0x1ed   :  { %v961_v26 = vadd.f32 %v2974_v24, %v3555_v23  ;;  %3021 = vmatprep.mubr.msk.bf16.mxu0 %vm1283_vm3, %v1060_v21  ;;  %v1032_v32 = vmax.f32 %v950_v25, 0.0  ;;  %v1152_v9 = vpop.permute.xlu0 %1151  ;;  %v1154_v10 = vpop.permute.xlu1 %1153 }
 0x1ee   :  { %v952_v28 = vpop.f32.mrf.mxu1  ;;  %3022 = vmatmul.mubr.msk.bf16.gmra.mxu0 %vm1283_vm3, %v1061_v22 }
 0x1ef   :  { %v953_v29 = vadd.f32 %v3555_v23, %v952_v28  ;;  %v1035_v30 = vmax.f32 %v961_v26, 0.0  ;;  %v3649_v26 = vld [vmem:[%s3994_s6] ss:$0 sm:$0xff] }
 0x1f0   :  { %v2977_v31 = vpop.f32.mrf.mxu1 }
 0x1f1   :  { %v1033_v33 = vmax.f32 %v953_v29, 0.0  ;;  %v1063_v37 = vpack.c.bf16 %v1035_v30, %v1034_v34  ;;  %v974_v42 = vadd.f32 %v2977_v31, %v3555_v23  ;;  %v1156_v11 = vpop.permute.xlu0 %1155  ;;  %v3632_v12 = vpop.permute.xlu1 %1157 }
 0x1f2   :  { %v965_v35 = vpop.f32.mrf.mxu1 }
 0x1f3   :  { %v1062_v36 = vpack.c.bf16 %v1033_v33, %v1032_v32  ;;  %v966_v40 = vadd.f32 %v3555_v23, %v965_v35  ;;  %v1038_v49 = vmax.f32 %v974_v42, 0.0 }
 0x1f4   :  { %v2978_v38 = vpop.f32.mrf.mxu1 }
 0x1f5   :  { %v977_v41 = vadd.f32 %v2978_v38, %v3555_v23  ;;  %3025 = vmatprep.mubr.msk.bf16.mxu0 %vm1283_vm3, %v1062_v36  ;;  %v1036_v47 = vmax.f32 %v966_v40, 0.0  ;;  %v1160_v13 = vpop.permute.xlu0 %1159  ;;  %v1162_v14 = vpop.permute.xlu1 %1161 }
 0x1f6   :  { %v968_v43 = vpop.f32.mrf.mxu1  ;;  %3026 = vmatmul.mubr.msk.bf16.gmra.mxu0 %vm1283_vm3, %v1063_v37 }
 0x1f7   :  { %v969_v44 = vadd.f32 %v3555_v23, %v968_v43  ;;  %v1039_v45 = vmax.f32 %v977_v41, 0.0 }
 0x1f8   :  { %v2981_v46 = vpop.f32.mrf.mxu1 }
 0x1f9   :  { %v1037_v48 = vmax.f32 %v969_v44, 0.0  ;;  %v1065_v52 = vpack.c.bf16 %v1039_v45, %v1038_v49  ;;  %v990_v56 = vadd.f32 %v2981_v46, %v3555_v23  ;;  %v3634_v15 = vpop.permute.xlu0 %1163  ;;  %v3636_v16 = vpop.permute.xlu1 %1165 }
 0x1fa   :  { %v981_v50 = vpop.f32.mrf.mxu1 }
 0x1fb   :  { %v1064_v51 = vpack.c.bf16 %v1037_v48, %v1036_v47  ;;  %v982_v54 = vadd.f32 %v3555_v23, %v981_v50  ;;  %v1042_v62 = vmax.f32 %v990_v56, 0.0 }
 0x1fc   :  { %v2982_v53 = vpop.f32.mrf.mxu1 }
 0x1fd   :  { %v993_v55 = vadd.f32 %v2982_v53, %v3555_v23  ;;  %3029 = vmatprep.mubr.msk.bf16.mxu0 %vm1283_vm3, %v1064_v51  ;;  %v1040_v60 = vmax.f32 %v982_v54, 0.0  ;;  %v3638_v17 = vpop.permute.xlu0 %1167  ;;  %v3640_v39 = vpop.permute.xlu1 %1169 }
 0x1fe   :  { %v984_v57 = vpop.f32.mrf.mxu1  ;;  %3030 = vmatmul.mubr.msk.bf16.gmra.mxu0 %vm1283_vm3, %v1065_v52 }
 0x1ff   :  { %v985_v58 = vadd.f32 %v3555_v23, %v984_v57  ;;  %v1043_v59 = vmax.f32 %v993_v55, 0.0  ;;  %v2759_v23 = vld [vmem:[#allocation2] ss:$0 sm:$0xff] }
 0x200   :  { %2051 = vperm.xlu0 %3096, %v2759_v23  }
 0x201   :  { %v1041_v61 = vmax.f32 %v985_v58, 0.0  ;;  %v1067_v0 = vpack.c.bf16 %v1043_v59, %v1042_v62  ;;  %v3642_v19 = vpop.permute.xlu0 %1171  ;;  %v3644_v20 = vpop.permute.xlu1 %1173 }
 0x203   :  { %v1066_v63 = vpack.c.bf16 %v1041_v61, %v1040_v60 }
 0x205   :  { %3033 = vmatprep.mubr.msk.bf16.mxu0 %vm1283_vm3, %v1066_v63  ;;  %v3651_v29 = vpop.permute.xlu0 %1175  ;;  %v3655_v33 = vpop.permute.xlu1 %1177 }
 0x206   :  { %3034 = vmatmul.mubr.msk.bf16.gmra.mxu0 %vm1283_vm3, %v1067_v0  ;;  %vm2611_vm3 = vcmask 1041409  }
 0x209   :  { %v3659_v46 = vpop.permute.xlu0 %1179  ;;  %v3661_v49 = vpop.permute.xlu1 %1181 }
 0x20d   :  { %v3669_v60 = vpop.permute.xlu0 %1183  ;;  %v3671_v0 = vpop.permute.xlu1 %1185 }
 0x26e   :  { %v2991_v18 = vpop.f32.mrf.mxu0 }
 0x26f   :  { %v1406_v24 = vadd.f32 %v2991_v18, %v1144_v3  ;;  %v3679_v18 = vpop.permute.xlu0 %1187 }
 0x270   :  { %v1397_v21 = vpop.f32.mrf.mxu0 }
 0x271   :  { %v1398_v22 = vadd.f32 %v1397_v21, %v1140_v2  ;;  %v1597_v34 = vadd.f32 %v3649_v26, %v1406_v24 }
 0x272   :  { %v2992_v25 = vpop.f32.mrf.mxu0 }
 0x273   :  { %v1409_v27 = vadd.f32 %v2992_v25, %v1146_v6  ;;  %v1595_v30 = vadd.f32 %v3649_v26, %v1398_v22  ;;  %v1645_v43 = vmax.f32 %v1597_v34, 0.0 }
 0x274   :  { %v1400_v28 = vpop.f32.mrf.mxu0 }
 0x275   :  { %v1598_v31 = vadd.f32 %v3649_v26, %v1409_v27  ;;  %v1401_v32 = vadd.f32 %v1400_v28, %v1142_v5  ;;  %v1643_v40 = vmax.f32 %v1595_v30, 0.0 }
 0x276   :  { %v2995_v35 = vpop.f32.mrf.mxu0 }
 0x277   :  { %v1596_v36 = vadd.f32 %v3649_v26, %v1401_v32  ;;  %v1646_v37 = vmax.f32 %v1598_v31, 0.0  ;;  %v1422_v44 = vadd.f32 %v2995_v35, %v1152_v9 }
 0x278   :  { %v1413_v38 = vpop.f32.mrf.mxu0 }
 0x279   :  { %v1644_v41 = vmax.f32 %v1596_v36, 0.0  ;;  %v1414_v42 = vadd.f32 %v1413_v38, %v1148_v7  ;;  %v1692_v50 = vpack.c.bf16 %v1646_v37, %v1645_v43  ;;  %v1601_v55 = vadd.f32 %v3649_v26, %v1422_v44  ;;  %v1192_v36 = vpop.permute.xlu0 %1191 }
 0x27a   :  { %v2996_v45 = vpop.f32.mrf.mxu0 }
 0x27b   :  { %v1691_v47 = vpack.c.bf16 %v1644_v41, %v1643_v40  ;;  %v1425_v48 = vadd.f32 %v2996_v45, %v1154_v10  ;;  %v1599_v52 = vadd.f32 %v3649_v26, %v1414_v42  ;;  %v1649_v1 = vmax.f32 %v1601_v55, 0.0 }
 0x27c   :  { %v1416_v51 = vpop.f32.mrf.mxu0 }
 0x27d   :  { %v1602_v53 = vadd.f32 %v3649_v26, %v1425_v48  ;;  %v1417_v54 = vadd.f32 %v1416_v51, %v1150_v8  ;;  %3045 = vmatprep.mubr.msk.bf16.mxu1 %vm235_vm0, %v1691_v47  ;;  %v1647_v61 = vmax.f32 %v1599_v52, 0.0  ;;  %v3696_v51 = vpop.permute.xlu0 %1195 }
 0x27e   :  { %v2999_v56 = vpop.f32.mrf.mxu0  ;;  %3046 = vmatmul.mubr.msk.bf16.vlgmr.msra.gmra.mxu1 %vm235_vm0, %v1692_v50 }
 0x27f   :  { %v1600_v57 = vadd.f32 %v3649_v26, %v1417_v54  ;;  %v1650_v58 = vmax.f32 %v1602_v53, 0.0  ;;  %v1438_v2 = vadd.f32 %v2999_v56, %v1160_v13 }
 0x280   :  { %v1429_v59 = vpop.f32.mrf.mxu0 }
 0x281   :  { %v1648_v62 = vmax.f32 %v1600_v57, 0.0  ;;  %v1430_v63 = vadd.f32 %v1429_v59, %v1156_v11  ;;  %v1694_v5 = vpack.c.bf16 %v1650_v58, %v1649_v1  ;;  %v1605_v10 = vadd.f32 %v3649_v26, %v1438_v2 }
 0x282   :  { %v3000_v3 = vpop.f32.mrf.mxu0 }
 0x283   :  { %v1693_v4 = vpack.c.bf16 %v1648_v62, %v1647_v61  ;;  %v1441_v23 = vadd.f32 %v3000_v3, %v1162_v14  ;;  %v1603_v7 = vadd.f32 %v3649_v26, %v1430_v63  ;;  %v3682_v14 = vpop.permute.xlu1 %1189  ;;  %v1200_v63 = vpop.permute.xlu0 %1199 }
 0x284   :  { %v1432_v6 = vpop.f32.mrf.mxu0 }
 0x285   :  { %v1606_v8 = vadd.f32 %v3649_v26, %v1441_v23  ;;  %v1433_v9 = vadd.f32 %v1432_v6, %v3632_v12  ;;  %3049 = vmatprep.mubr.msk.bf16.mxu1 %vm235_vm0, %v1693_v4  ;;  %v1651_v24 = vmax.f32 %v1603_v7, 0.0  ;;  %v1653_v12 = vmax.f32 %v1605_v10, 0.0 }
 0x286   :  { %v3003_v11 = vpop.f32.mrf.mxu0  ;;  %3050 = vmatmul.mubr.msk.bf16.gmra.mxu1 %vm235_vm0, %v1694_v5 }
 0x287   :  { %v1604_v13 = vadd.f32 %v3649_v26, %v1433_v9  ;;  %v1654_v21 = vmax.f32 %v1606_v8, 0.0  ;;  %v1454_v28 = vadd.f32 %v3003_v11, %v3638_v17  ;;  %v1194_v41 = vpop.permute.xlu1 %1193 }
 0x288   :  { %v1445_v22 = vpop.f32.mrf.mxu0 }
 0x289   :  { %v1652_v25 = vmax.f32 %v1604_v13, 0.0  ;;  %v1446_v27 = vadd.f32 %v1445_v22, %v3634_v15  ;;  %v1696_v34 = vpack.c.bf16 %v1654_v21, %v1653_v12  ;;  %v1609_v15 = vadd.f32 %v3649_v26, %v1454_v28 }
 0x28a   :  { %v3004_v30 = vpop.f32.mrf.mxu0 }
 0x28b   :  { %v1695_v31 = vpack.c.bf16 %v1652_v25, %v1651_v24  ;;  %v1457_v32 = vadd.f32 %v3004_v30, %v3640_v39  ;;  %v1607_v37 = vadd.f32 %v3649_v26, %v1446_v27  ;;  %v1657_v48 = vmax.f32 %v1609_v15, 0.0  ;;  %v3699_v54 = vpop.permute.xlu1 %1197 }
 0x28c   :  { %v1448_v35 = vpop.f32.mrf.mxu0 }
 0x28d   :  { %v1610_v38 = vadd.f32 %v3649_v26, %v1457_v32  ;;  %v1449_v40 = vadd.f32 %v1448_v35, %v3636_v16  ;;  %3053 = vmatprep.mubr.msk.bf16.mxu1 %vm235_vm0, %v1695_v31  ;;  %v1655_v44 = vmax.f32 %v1607_v37, 0.0 }
 0x28e   :  { %v3007_v42 = vpop.f32.mrf.mxu0  ;;  %3054 = vmatmul.mubr.msk.bf16.gmra.mxu1 %vm235_vm0, %v1696_v34 }
 0x28f   :  { %v1608_v17 = vadd.f32 %v3649_v26, %v1449_v40  ;;  %v1658_v39 = vmax.f32 %v1610_v38, 0.0  ;;  %v1470_v50 = vadd.f32 %v3007_v42, %v3651_v29  ;;  %v1202_v4 = vpop.permute.xlu1 %1201 }
 0x290   :  { %v1461_v43 = vpop.f32.mrf.mxu0 }
 0x291   :  { %v1656_v45 = vmax.f32 %v1608_v17, 0.0  ;;  %v1462_v47 = vadd.f32 %v1461_v43, %v3642_v19  ;;  %v1698_v55 = vpack.c.bf16 %v1658_v39, %v1657_v48  ;;  %v1613_v19 = vadd.f32 %v3649_v26, %v1470_v50 }
 0x292   :  { %v3008_v16 = vpop.f32.mrf.mxu0 }
 0x293   :  { %v1697_v52 = vpack.c.bf16 %v1656_v45, %v1655_v44  ;;  %v1473_v53 = vadd.f32 %v3008_v16, %v3655_v33  ;;  %v1611_v57 = vadd.f32 %v3649_v26, %v1462_v47  ;;  %v1661_v23 = vmax.f32 %v1613_v19, 0.0  ;;  %v1206_v24 = vpop.permute.xlu1 %1205 }
 0x294   :  { %v1464_v56 = vpop.f32.mrf.mxu0 }
 0x295   :  { %v1614_v58 = vadd.f32 %v3649_v26, %v1473_v53  ;;  %v1465_v59 = vadd.f32 %v1464_v56, %v3644_v20  ;;  %3057 = vmatprep.mubr.msk.bf16.mxu1 %vm235_vm0, %v1697_v52  ;;  %v1659_v1 = vmax.f32 %v1611_v57, 0.0 }
 0x296   :  { %v3011_v29 = vpop.f32.mrf.mxu0  ;;  %3058 = vmatmul.mubr.msk.bf16.gmra.mxu1 %vm235_vm0, %v1698_v55 }
 0x297   :  { %v1612_v61 = vadd.f32 %v3649_v26, %v1465_v59  ;;  %v1662_v33 = vmax.f32 %v1614_v58, 0.0  ;;  %v1486_v20 = vadd.f32 %v3011_v29, %v3669_v60  ;;  %v1204_v60 = vpop.permute.xlu0 %1203  ;;  %v1210_v17 = vpop.permute.xlu1 %1209 }
 0x298   :  { %v1477_v62 = vpop.f32.mrf.mxu0 }
 0x299   :  { %v1660_v2 = vmax.f32 %v1612_v61, 0.0  ;;  %v1478_v3 = vadd.f32 %v1477_v62, %v3659_v46  ;;  %v1700_v8 = vpack.c.bf16 %v1662_v33, %v1661_v23  ;;  %v1617_v46 = vadd.f32 %v3649_v26, %v1486_v20 }
 0x29a   :  { %v3012_v5 = vpop.f32.mrf.mxu0 }
 0x29b   :  { %v1699_v6 = vpack.c.bf16 %v1660_v2, %v1659_v1  ;;  %v1489_v7 = vadd.f32 %v3012_v5, %v3671_v0  ;;  %v1615_v10 = vadd.f32 %v3649_v26, %v1478_v3  ;;  %v1665_v30 = vmax.f32 %v1617_v46, 0.0  ;;  %v1208_v38 = vpop.permute.xlu0 %1207  ;;  %v1214_v55 = vpop.permute.xlu1 %1213 }
 0x29c   :  { %v1480_v9 = vpop.f32.mrf.mxu0 }
 0x29d   :  { %v1618_v11 = vadd.f32 %v3649_v26, %v1489_v7  ;;  %v1481_v13 = vadd.f32 %v1480_v9, %v3661_v49  ;;  %3061 = vmatprep.mubr.msk.bf16.mxu1 %vm235_vm0, %v1699_v6  ;;  %v1663_v27 = vmax.f32 %v1615_v10, 0.0 }
 0x29e   :  { %v3015_v21 = vpop.f32.mrf.mxu0  ;;  %3062 = vmatmul.mubr.msk.bf16.gmra.mxu1 %vm235_vm0, %v1700_v8 }
 0x29f   :  { %v1616_v22 = vadd.f32 %v3649_v26, %v1481_v13  ;;  %v1666_v0 = vmax.f32 %v1618_v11, 0.0  ;;  %v1502_v31 = vadd.f32 %v3015_v21, %v1192_v36 }
 0x2a0   :  { %v1493_v25 = vpop.f32.mrf.mxu0 }
 0x2a1   :  { %v1664_v12 = vmax.f32 %v1616_v22, 0.0  ;;  %v1494_v28 = vadd.f32 %v1493_v25, %v3679_v18  ;;  %v1702_v35 = vpack.c.bf16 %v1666_v0, %v1665_v30  ;;  %v1621_v39 = vadd.f32 %v3649_v26, %v1502_v31 }
 0x2a2   :  { %v3016_v49 = vpop.f32.mrf.mxu0 }
 0x2a3   :  { %v1701_v32 = vpack.c.bf16 %v1664_v12, %v1663_v27  ;;  %v1505_v34 = vadd.f32 %v3016_v49, %v1194_v41  ;;  %v1619_v40 = vadd.f32 %v3649_v26, %v1494_v28  ;;  %v1669_v48 = vmax.f32 %v1621_v39, 0.0 }
 0x2a4   :  { %v1496_v37 = vpop.f32.mrf.mxu0 }
 0x2a5   :  { %v1622_v15 = vadd.f32 %v3649_v26, %v1505_v34  ;;  %v1497_v42 = vadd.f32 %v1496_v37, %v3682_v14  ;;  %3065 = vmatprep.mubr.msk.bf16.mxu1 %vm235_vm0, %v1701_v32  ;;  %v1667_v44 = vmax.f32 %v1619_v40, 0.0  ;;  %v1212_v14 = vpop.permute.xlu0 %1211 }
 0x2a6   :  { %v3019_v18 = vpop.f32.mrf.mxu0  ;;  %3066 = vmatmul.mubr.msk.bf16.gmra.mxu1 %vm235_vm0, %v1702_v35 }
 0x2a7   :  { %v1620_v36 = vadd.f32 %v3649_v26, %v1497_v42  ;;  %v1670_v41 = vmax.f32 %v1622_v15, 0.0  ;;  %v1518_v50 = vadd.f32 %v3019_v18, %v1200_v63 }
 0x2a8   :  { %v1509_v43 = vpop.f32.mrf.mxu0 }
 0x2a9   :  { %v1668_v45 = vmax.f32 %v1620_v36, 0.0  ;;  %v1510_v47 = vadd.f32 %v1509_v43, %v3696_v51  ;;  %v1704_v56 = vpack.c.bf16 %v1670_v41, %v1669_v48  ;;  %v1625_v29 = vadd.f32 %v3649_v26, %v1518_v50  ;;  %v1216_v63 = vpop.permute.xlu0 %1215 }
 0x2aa   :  { %v3020_v16 = vpop.f32.mrf.mxu0 }
 0x2ab   :  { %v1703_v52 = vpack.c.bf16 %v1668_v45, %v1667_v44  ;;  %v1521_v53 = vadd.f32 %v3020_v16, %v1202_v4  ;;  %v1623_v58 = vadd.f32 %v3649_v26, %v1510_v47  ;;  %v1218_v4 = vpop.permute.xlu1 %1217  ;;  %v1673_v23 = vmax.f32 %v1625_v29, 0.0 }
 0x2ac   :  { %v1512_v57 = vpop.f32.mrf.mxu0 }
 0x2ad   :  { %v1626_v59 = vadd.f32 %v3649_v26, %v1521_v53  ;;  %v1513_v19 = vadd.f32 %v1512_v57, %v3699_v54  ;;  %3069 = vmatprep.mubr.msk.bf16.mxu1 %vm235_vm0, %v1703_v52  ;;  %v1671_v1 = vmax.f32 %v1623_v58, 0.0  ;;  %v1220_v21 = vpop.permute.xlu0 %1219 }
 0x2ae   :  { %v3023_v51 = vpop.f32.mrf.mxu0  ;;  %3070 = vmatmul.mubr.msk.bf16.gmra.mxu1 %vm235_vm0, %v1704_v56 }
 0x2af   :  { %v1624_v61 = vadd.f32 %v3649_v26, %v1513_v19  ;;  %v1674_v33 = vmax.f32 %v1626_v59, 0.0  ;;  %v1534_v20 = vadd.f32 %v3023_v51, %v1208_v38  ;;  %v1222_v22 = vpop.permute.xlu1 %1221 }
 0x2b0   :  { %v1525_v62 = vpop.f32.mrf.mxu0 }
 0x2b1   :  { %v1672_v2 = vmax.f32 %v1624_v61, 0.0  ;;  %v1526_v3 = vadd.f32 %v1525_v62, %v1204_v60  ;;  %v1706_v7 = vpack.c.bf16 %v1674_v33, %v1673_v23  ;;  %v1629_v13 = vadd.f32 %v3649_v26, %v1534_v20  ;;  %v1224_v37 = vpop.permute.xlu0 %1223 }
 0x2b2   :  { %v3024_v5 = vpop.f32.mrf.mxu0 }
 0x2b3   :  { %v1705_v54 = vpack.c.bf16 %v1672_v2, %v1671_v1  ;;  %v1537_v6 = vadd.f32 %v3024_v5, %v1210_v17  ;;  %v1627_v9 = vadd.f32 %v3649_v26, %v1526_v3  ;;  %v1677_v30 = vmax.f32 %v1629_v13, 0.0  ;;  %v1226_v42 = vpop.permute.xlu1 %1225 }
 0x2b4   :  { %v1528_v8 = vpop.f32.mrf.mxu0 }
 0x2b5   :  { %v1630_v10 = vadd.f32 %v3649_v26, %v1537_v6  ;;  %v1529_v11 = vadd.f32 %v1528_v8, %v1206_v24  ;;  %3073 = vmatprep.mubr.msk.bf16.mxu1 %vm235_vm0, %v1705_v54  ;;  %v1675_v27 = vmax.f32 %v1627_v9, 0.0  ;;  %v1228_v16 = vpop.permute.xlu0 %1227 }
 0x2b6   :  { %v3027_v46 = vpop.f32.mrf.mxu0  ;;  %3074 = vmatmul.mubr.msk.bf16.gmra.mxu1 %vm235_vm0, %v1706_v7 }
 0x2b7   :  { %v1628_v60 = vadd.f32 %v3649_v26, %v1529_v11  ;;  %v1678_v0 = vmax.f32 %v1630_v10, 0.0  ;;  %v1550_v31 = vadd.f32 %v3027_v46, %v1216_v63  ;;  %v1230_v53 = vpop.permute.xlu1 %1229 }
 0x2b8   :  { %v1541_v25 = vpop.f32.mrf.mxu0 }
 0x2b9   :  { %v1676_v12 = vmax.f32 %v1628_v60, 0.0  ;;  %v1542_v28 = vadd.f32 %v1541_v25, %v1212_v14  ;;  %v1708_v34 = vpack.c.bf16 %v1678_v0, %v1677_v30  ;;  %v1633_v17 = vadd.f32 %v3649_v26, %v1550_v31  ;;  %v1232_v62 = vpop.permute.xlu0 %1231 }
 0x2ba   :  { %v3028_v49 = vpop.f32.mrf.mxu0 }
 0x2bb   :  { %v1707_v24 = vpack.c.bf16 %v1676_v12, %v1675_v27  ;;  %v1553_v32 = vadd.f32 %v3028_v49, %v1218_v4  ;;  %v1631_v38 = vadd.f32 %v3649_v26, %v1542_v28  ;;  %v1681_v47 = vmax.f32 %v1633_v17, 0.0  ;;  %v1234_v3 = vpop.permute.xlu1 %1233 }
 0x2bc   :  { %v1544_v35 = vpop.f32.mrf.mxu0 }
 0x2bd   :  { %v1634_v40 = vadd.f32 %v3649_v26, %v1553_v32  ;;  %v1545_v15 = vadd.f32 %v1544_v35, %v1214_v55  ;;  %3077 = vmatprep.mubr.msk.bf16.mxu1 %vm235_vm0, %v1707_v24  ;;  %v1679_v43 = vmax.f32 %v1631_v38, 0.0  ;;  %v3760_v27 = vpop.permute.xlu0 %2051 }
 0x2be   :  { %v3031_v39 = vpop.f32.mrf.mxu0  ;;  %3078 = vmatmul.mubr.msk.bf16.gmra.mxu1 %vm235_vm0, %v1708_v34 }
 0x2bf   :  { %v1632_v18 = vadd.f32 %v3649_v26, %v1545_v15  ;;  %v1682_v36 = vmax.f32 %v1634_v40, 0.0  ;;  %v1566_v48 = vadd.f32 %v3031_v39, %v1224_v37 }
 0x2c0   :  { %v1557_v41 = vpop.f32.mrf.mxu0 }
 0x2c1   :  { %v1680_v44 = vmax.f32 %v1632_v18, 0.0  ;;  %v1558_v45 = vadd.f32 %v1557_v41, %v1220_v21  ;;  %v1710_v55 = vpack.c.bf16 %v1682_v36, %v1681_v47  ;;  %v1637_v19 = vadd.f32 %v3649_v26, %v1566_v48 }
 0x2c2   :  { %v3032_v50 = vpop.f32.mrf.mxu0 }
 0x2c3   :  { %v1709_v14 = vpack.c.bf16 %v1680_v44, %v1679_v43  ;;  %v1569_v52 = vadd.f32 %v3032_v50, %v1226_v42  ;;  %v1635_v57 = vadd.f32 %v3649_v26, %v1558_v45  ;;  %v1685_v4 = vmax.f32 %v1637_v19, 0.0 }
 0x2c4   :  { %v1560_v56 = vpop.f32.mrf.mxu0 }
 0x2c5   :  { %v1638_v58 = vadd.f32 %v3649_v26, %v1569_v52  ;;  %v1561_v59 = vadd.f32 %v1560_v56, %v1222_v22  ;;  %3081 = vmatprep.mubr.msk.bf16.mxu1 %vm235_vm0, %v1709_v14  ;;  %v1683_v63 = vmax.f32 %v1635_v57, 0.0 }
 0x2c6   :  { %v3035_v29 = vpop.f32.mrf.mxu0  ;;  %3082 = vmatmul.mubr.msk.bf16.gmra.mxu1 %vm235_vm0, %v1710_v55 }
 0x2c7   :  { %v1636_v51 = vadd.f32 %v3649_v26, %v1561_v59  ;;  %v1686_v61 = vmax.f32 %v1638_v58, 0.0  ;;  %v1582_v23 = vadd.f32 %v3035_v29, %v1232_v62 }
 0x2c8   :  { %v1573_v33 = vpop.f32.mrf.mxu0 }
 0x2c9   :  { %v1684_v1 = vmax.f32 %v1636_v51, 0.0  ;;  %v1574_v2 = vadd.f32 %v1573_v33, %v1228_v16  ;;  %v1712_v6 = vpack.c.bf16 %v1686_v61, %v1685_v4  ;;  %v1641_v11 = vadd.f32 %v3649_v26, %v1582_v23 }
 0x2ca   :  { %v3036_v20 = vpop.f32.mrf.mxu0 }
 0x2cb   :  { %v1711_v5 = vpack.c.bf16 %v1684_v1, %v1683_v63  ;;  %v1585_v54 = vadd.f32 %v3036_v20, %v1234_v3  ;;  %v1639_v8 = vadd.f32 %v3649_v26, %v1574_v2  ;;  %v1689_v22 = vmax.f32 %v1641_v11, 0.0 }
 0x2cc   :  { %v1576_v7 = vpop.f32.mrf.mxu0 }
 0x2cd   :  { %v1642_v9 = vadd.f32 %v3649_v26, %v1585_v54  ;;  %v1577_v10 = vadd.f32 %v1576_v7, %v1230_v53  ;;  %3085 = vmatprep.mubr.msk.bf16.mxu1 %vm235_vm0, %v1711_v5  ;;  %v1687_v21 = vmax.f32 %v1639_v8, 0.0 }
 0x2ce   :  { %3086 = vmatmul.mubr.msk.bf16.gmra.mxu1 %vm235_vm0, %v1712_v6 }
 0x2cf   :  { %v1640_v13 = vadd.f32 %v3649_v26, %v1577_v10  ;;  %v1690_v46 = vmax.f32 %v1642_v9, 0.0 }
 0x2d1   :  { %v1688_v60 = vmax.f32 %v1640_v13, 0.0  ;;  %v1714_v25 = vpack.c.bf16 %v1690_v46, %v1689_v22 }
 0x2d3   :  { %v1713_v0 = vpack.c.bf16 %v1688_v60, %v1687_v21 }
 0x2d5   :  { %3089 = vmatprep.mubr.msk.bf16.mxu1 %vm235_vm0, %v1713_v0 }
 0x2d6   :  { %3090 = vmatmul.mubr.msk.bf16.gmra.mxu1 %vm235_vm0, %v1714_v25  ;;  %vm2437_vm0 = vcmask 917312  }
 0x33e   :  { %v3047_v12 = vpop.f32.mrf.mxu1 }
 0x33f   :  { %v2056_v28 = vadd.f32 %v3047_v12, %v3760_v27 }
 0x340   :  { %v1853_v30 = vpop.f32.mrf.mxu1 }
 0x341   :  { %3137 = vtanh.f32 %v2056_v28  ;;  %v2054_v31 = vadd.f32 %v3760_v27, %v1853_v30 }
 0x342   :  { %v3048_v26 = vpop.f32.mrf.mxu1 }
 0x343   :  { %3139 = vtanh.f32 %v2054_v31  ;;  %v2057_v49 = vadd.f32 %v3048_v26, %v3760_v27 }
 0x344   :  { %v1856_v24 = vpop.f32.mrf.mxu1 }
 0x345   :  { %3141 = vtanh.f32 %v2057_v49  ;;  %v2055_v34 = vadd.f32 %v3760_v27, %v1856_v24 }
 0x346   :  { %v3051_v32 = vpop.f32.mrf.mxu1 }
 0x347   :  { %v2060_v35 = vadd.f32 %v3051_v32, %v3760_v27 }
 0x348   :  { %v1869_v37 = vpop.f32.mrf.mxu1 }
 0x349   :  { %3143 = vtanh.f32 %v2060_v35  ;;  %v2058_v38 = vadd.f32 %v3760_v27, %v1869_v37 }
 0x34a   :  { %v3052_v40 = vpop.f32.mrf.mxu1  ;;  %3145 = vtanh.f32 %v2055_v34 }
 0x34b   :  { %v2061_v15 = vadd.f32 %v3052_v40, %v3760_v27  ;;  %3147 = vtanh.f32 %v2058_v38 }
 0x34c   :  { %v1872_v42 = vpop.f32.mrf.mxu1 }
 0x34d   :  { %3149 = vtanh.f32 %v2061_v15  ;;  %v2059_v18 = vadd.f32 %v3760_v27, %v1872_v42 }
 0x34e   :  { %v3138_v17 = vpop.eup %3137  ;;  %v3055_v39 = vpop.f32.mrf.mxu1 }
 0x34f   :  { %v2064_v36 = vadd.f32 %v3055_v39, %v3760_v27  ;;  %2205 = vperm.xlu0 %3096, %v3138_v17  }
 0x350   :  { %v3140_v41 = vpop.eup %3139  ;;  %v1885_v43 = vpop.f32.mrf.mxu1 }
 0x351   :  { %3151 = vtanh.f32 %v2064_v36  ;;  %v2062_v44 = vadd.f32 %v3760_v27, %v1885_v43  ;;  %2199 = vperm.xlu1 %3097, %v3140_v41  }
 0x352   :  { %v3056_v45 = vpop.f32.mrf.mxu1  ;;  %3153 = vtanh.f32 %v2059_v18  ;;  %v3142_v48 = vpop.eup %3141 }
 0x353   :  { %v2065_v47 = vadd.f32 %v3056_v45, %v3760_v27  ;;  %3155 = vtanh.f32 %v2062_v44 }
 0x354   :  { %v1888_v50 = vpop.f32.mrf.mxu1 }
 0x355   :  { %2208 = vperm.xlu1 %3097, %v3142_v48   ;;  %3157 = vtanh.f32 %v2065_v47  ;;  %v2063_v52 = vadd.f32 %v3760_v27, %v1888_v50 }
 0x356   :  { %v3144_v16 = vpop.eup %3143  ;;  %v3059_v14 = vpop.f32.mrf.mxu1 }
 0x357   :  { %v2068_v53 = vadd.f32 %v3059_v14, %v3760_v27  ;;  %2217 = vperm.xlu0 %3096, %v3144_v16   ;;  %v3146_v55 = vpop.eup %3145 }
 0x358   :  { %v1901_v56 = vpop.f32.mrf.mxu1  ;;  %v3148_v58 = vpop.eup %3147 }
 0x359   :  { %3159 = vtanh.f32 %v2068_v53  ;;  %v2066_v57 = vadd.f32 %v3760_v27, %v1901_v56  ;;  %2202 = vperm.xlu1 %3097, %v3146_v55  }
 0x35a   :  { %v3060_v59 = vpop.f32.mrf.mxu1  ;;  %3161 = vtanh.f32 %v2063_v52  ;;  %v3150_v29 = vpop.eup %3149 }
 0x35b   :  { %v2069_v19 = vadd.f32 %v3060_v59, %v3760_v27  ;;  %2211 = vperm.xlu0 %3096, %v3148_v58   ;;  %3163 = vtanh.f32 %v2066_v57 }
 0x35c   :  { %v1904_v51 = vpop.f32.mrf.mxu1 }
 0x35d   :  { %2220 = vperm.xlu1 %3097, %v3150_v29   ;;  %3165 = vtanh.f32 %v2069_v19  ;;  %v2067_v62 = vadd.f32 %v3760_v27, %v1904_v51 }
 0x35e   :  { %v3152_v61 = vpop.eup %3151  ;;  %v3063_v33 = vpop.f32.mrf.mxu1 }
 0x35f   :  { %v2072_v63 = vadd.f32 %v3063_v33, %v3760_v27  ;;  %2229 = vperm.xlu0 %3096, %v3152_v61   ;;  %v3154_v1 = vpop.eup %3153 }
 0x360   :  { %v1917_v2 = vpop.f32.mrf.mxu1  ;;  %v3156_v4 = vpop.eup %3155 }
 0x361   :  { %3167 = vtanh.f32 %v2072_v63  ;;  %v2070_v3 = vadd.f32 %v3760_v27, %v1917_v2  ;;  %2214 = vperm.xlu1 %3097, %v3154_v1  }
 0x362   :  { %v3064_v23 = vpop.f32.mrf.mxu1  ;;  %3169 = vtanh.f32 %v2067_v62  ;;  %v3158_v5 = vpop.eup %3157 }
 0x363   :  { %v2073_v20 = vadd.f32 %v3064_v23, %v3760_v27  ;;  %2223 = vperm.xlu0 %3096, %v3156_v4   ;;  %3171 = vtanh.f32 %v2070_v3 }
 0x364   :  { %v1920_v54 = vpop.f32.mrf.mxu1 }
 0x365   :  { %2232 = vperm.xlu1 %3097, %v3158_v5   ;;  %3173 = vtanh.f32 %v2073_v20  ;;  %v2071_v8 = vadd.f32 %v3760_v27, %v1920_v54 }
 0x366   :  { %v3160_v6 = vpop.eup %3159  ;;  %v3067_v7 = vpop.f32.mrf.mxu1 }
 0x367   :  { %v2076_v9 = vadd.f32 %v3067_v7, %v3760_v27  ;;  %2241 = vperm.xlu0 %3096, %v3160_v6   ;;  %v3162_v10 = vpop.eup %3161 }
 0x368   :  { %v1933_v11 = vpop.f32.mrf.mxu1  ;;  %v3164_v46 = vpop.eup %3163 }
 0x369   :  { %3175 = vtanh.f32 %v2076_v9  ;;  %v2074_v13 = vadd.f32 %v3760_v27, %v1933_v11  ;;  %2226 = vperm.xlu1 %3097, %v3162_v10  }
 0x36a   :  { %v3068_v21 = vpop.f32.mrf.mxu1  ;;  %3177 = vtanh.f32 %v2071_v8  ;;  %v3166_v22 = vpop.eup %3165 }
 0x36b   :  { %v2077_v60 = vadd.f32 %v3068_v21, %v3760_v27  ;;  %2235 = vperm.xlu0 %3096, %v3164_v46   ;;  %3179 = vtanh.f32 %v2074_v13 }
 0x36c   :  { %v1936_v0 = vpop.f32.mrf.mxu1 }
 0x36d   :  { %2244 = vperm.xlu1 %3097, %v3166_v22   ;;  %3181 = vtanh.f32 %v2077_v60  ;;  %v2075_v28 = vadd.f32 %v3760_v27, %v1936_v0 }
 0x36e   :  { %v3168_v25 = vpop.eup %3167  ;;  %v3071_v12 = vpop.f32.mrf.mxu1 }
 0x36f   :  { %v2080_v30 = vadd.f32 %v3071_v12, %v3760_v27  ;;  %2253 = vperm.xlu0 %3096, %v3168_v25   ;;  %v3170_v31 = vpop.eup %3169 }
 0x370   :  { %v1949_v26 = vpop.f32.mrf.mxu1  ;;  %v3172_v24 = vpop.eup %3171 }
 0x371   :  { %3183 = vtanh.f32 %v2080_v30  ;;  %v2078_v49 = vadd.f32 %v3760_v27, %v1949_v26  ;;  %2238 = vperm.xlu1 %3097, %v3170_v31  }
 0x372   :  { %v3072_v32 = vpop.f32.mrf.mxu1  ;;  %3185 = vtanh.f32 %v2075_v28  ;;  %v3174_v35 = vpop.eup %3173 }
 0x373   :  { %v2081_v34 = vadd.f32 %v3072_v32, %v3760_v27  ;;  %2247 = vperm.xlu0 %3096, %v3172_v24   ;;  %3187 = vtanh.f32 %v2078_v49 }
 0x374   :  { %v1952_v37 = vpop.f32.mrf.mxu1 }
 0x375   :  { %2256 = vperm.xlu1 %3097, %v3174_v35   ;;  %3189 = vtanh.f32 %v2081_v34  ;;  %v2079_v15 = vadd.f32 %v3760_v27, %v1952_v37 }
 0x376   :  { %v3176_v38 = vpop.eup %3175  ;;  %v3075_v40 = vpop.f32.mrf.mxu1 }
 0x377   :  { %2265 = vperm.xlu0 %3096, %v3176_v38   ;;  %v3178_v42 = vpop.eup %3177  ;;  %3191 = vtanh.f32 %v2079_v15  ;;  %v2084_v36 = vadd.f32 %v3075_v40, %v3760_v27 }
 0x378   :  { %v1965_v17 = vpop.f32.mrf.mxu1  ;;  %v3180_v39 = vpop.eup %3179 }
 0x379   :  { %2250 = vperm.xlu1 %3097, %v3178_v42   ;;  %3193 = vtanh.f32 %v2084_v36  ;;  %v2082_v47 = vadd.f32 %v3760_v27, %v1965_v17 }
 0x37a   :  { %v3790_v18 = vpop.f32.mrf.mxu1  ;;  %v3182_v41 = vpop.eup %3181 }
 0x37b   :  { %2259 = vperm.xlu0 %3096, %v3180_v39   ;;  %v2085_v28 = vadd.f32 %v3790_v18, %v3760_v27  ;;  %v2342_v18 = vlaneseq }
 0x37c   :  { %v1968_v43 = vpop.f32.mrf.mxu1 }
 0x37d   :  { %2268 = vperm.xlu1 %3097, %v3182_v41   ;;  %v2083_v55 = vadd.f32 %v3760_v27, %v1968_v43  ;;  %v3813_v36 = vand.u32 127, %v2342_v18 }
 0x37e   :  { %v3184_v44 = vpop.eup %3183  ;;  %v3079_v45 = vpop.f32.mrf.mxu1 }
 0x37f   :  { %v2088_v48 = vadd.f32 %v3079_v45, %v3760_v27  ;;  %2277 = vperm.xlu0 %3096, %v3184_v44   ;;  %v3186_v50 = vpop.eup %3185  ;;  %v2348_v43 = vadd.s32 4294967288, %v3813_v36  ;;  %v3816_v44 = vshrl.u32 %v2342_v18, 7  ;;  %v2355_v45 = vadd.s32 4294967280, %v3813_v36 }
 0x380   :  { %v1981_v16 = vpop.f32.mrf.mxu1  ;;  %v3188_v52 = vpop.eup %3187 }
 0x381   :  { %3195 = vtanh.f32 %v2088_v48  ;;  %v2086_v14 = vadd.f32 %v3760_v27, %v1981_v16  ;;  %2262 = vperm.xlu1 %3097, %v3186_v50   ;;  %v2362_v48 = vadd.s32 4294967272, %v3813_v36  ;;  %v2369_v50 = vadd.s32 4294967264, %v3813_v36 }
 0x382   :  { %v3080_v53 = vpop.f32.mrf.mxu1  ;;  %3197 = vtanh.f32 %v2082_v47  ;;  %v3190_v56 = vpop.eup %3189 }
 0x383   :  { %2271 = vperm.xlu0 %3096, %v3188_v52   ;;  %3199 = vtanh.f32 %v2086_v14  ;;  %v2089_v59 = vadd.f32 %v3080_v53, %v3760_v27  ;;  %v3823_v14 = vsub.s32 %v3813_v36, %v3816_v44  ;;  %v3826_v52 = vsub.s32 %v2348_v43, %v3816_v44 }
 0x384   :  { %v1984_v57 = vpop.f32.mrf.mxu1  ;;  %3201 = vtanh.f32 %v2083_v55  ;;  %v3192_v29 = vpop.eup %3191  ;;  %v3829_v53 = vsub.s32 %v2355_v45, %v3816_v44 }
 0x385   :  { %2280 = vperm.xlu1 %3097, %v3190_v56   ;;  %v2087_v62 = vadd.f32 %v3760_v27, %v1984_v57  ;;  %v3832_v56 = vsub.s32 %v2362_v48, %v3816_v44  ;;  %v3835_v57 = vsub.s32 %v2369_v50, %v3816_v44 }
 0x386   :  { %v3083_v58 = vpop.f32.mrf.mxu1  ;;  %v3194_v63 = vpop.eup %3193 }
 0x387   :  { %v2092_v19 = vadd.f32 %v3083_v58, %v3760_v27  ;;  %v2383_v58 = vadd.s32 4294967248, %v3813_v36 }
 0x388   :  { %v1997_v51 = vpop.f32.mrf.mxu1 }
 0x389   :  { %3203 = vtanh.f32 %v2092_v19  ;;  %v2090_v61 = vadd.f32 %v3760_v27, %v1997_v51  ;;  %2274 = vperm.xlu1 %3097, %v3192_v29   ;;  %v2376_v51 = vadd.s32 4294967256, %v3813_v36 }
 0x38a   :  { %v3084_v33 = vpop.f32.mrf.mxu1  ;;  %3205 = vtanh.f32 %v2089_v59 }
 0x38b   :  { %3207 = vtanh.f32 %v2090_v61  ;;  %v2093_v4 = vadd.f32 %v3084_v33, %v3760_v27 }
 0x38c   :  { %v2000_v1 = vpop.f32.mrf.mxu1  ;;  %3209 = vtanh.f32 %v2087_v62  ;;  %v2390_v62 = vadd.s32 4294967240, %v3813_v36 }
 0x38d   :  { %2289 = vperm.xlu1 %3097, %v3194_v63   ;;  %v2091_v8 = vadd.f32 %v3760_v27, %v2000_v1 }
 0x38e   :  { %v3196_v2 = vpop.eup %3195  ;;  %v3087_v3 = vpop.f32.mrf.mxu1 }
 0x38f   :  { %v2096_v23 = vadd.f32 %v3087_v3, %v3760_v27  ;;  %2301 = vperm.xlu0 %3096, %v3196_v2   ;;  %v3198_v20 = vpop.eup %3197  ;;  %v2397_v3 = vadd.s32 4294967232, %v3813_v36 }
 0x390   :  { %v2013_v5 = vpop.f32.mrf.mxu1  ;;  %v3200_v6 = vpop.eup %3199 }
 0x391   :  { %3211 = vtanh.f32 %v2096_v23  ;;  %v2094_v54 = vadd.f32 %v3760_v27, %v2013_v5  ;;  %2283 = vperm.xlu1 %3097, %v3198_v20   ;;  %v3202_v9 = vpop.eup %3201  ;;  %v3850_v5 = vsub.s32 %v2376_v51, %v3816_v44 }
 0x392   :  { %v3088_v7 = vpop.f32.mrf.mxu1  ;;  %3213 = vtanh.f32 %v2093_v4 }
 0x393   :  { %2295 = vperm.xlu0 %3096, %v3200_v6   ;;  %3215 = vtanh.f32 %v2094_v54  ;;  %v2097_v11 = vadd.f32 %v3088_v7, %v3760_v27  ;;  %v3853_v54 = vsub.s32 %v2383_v58, %v3816_v44 }
 0x394   :  { %v2016_v10 = vpop.f32.mrf.mxu1  ;;  %3217 = vtanh.f32 %v2091_v8  ;;  %v3857_v8 = vsub.s32 %v2390_v62, %v3816_v44 }
 0x395   :  { %2286 = vperm.xlu1 %3097, %v3202_v9   ;;  %v2095_v21 = vadd.f32 %v3760_v27, %v2016_v10  ;;  %3219 = vtanh.f32 %v2097_v11  ;;  %v3860_v9 = vsub.s32 %v2397_v3, %v3816_v44 }
 0x396   :  { %v3204_v13 = vpop.eup %3203  ;;  %v3091_v46 = vpop.f32.mrf.mxu1 }
 0x397   :  { %2313 = vperm.xlu0 %3096, %v3204_v13   ;;  %v3206_v60 = vpop.eup %3205  ;;  %3221 = vtanh.f32 %v2095_v21  ;;  %v2100_v34 = vadd.f32 %v3091_v46, %v3760_v27  ;;  %v2404_v13 = vadd.s32 4294967224, %v3813_v36  ;;  %v2411_v21 = vadd.s32 4294967216, %v3813_v36 }
 0x398   :  { %v2029_v22 = vpop.f32.mrf.mxu1  ;;  %v3208_v25 = vpop.eup %3207 }
 0x399   :  { %v2098_v0 = vadd.f32 %v3760_v27, %v2029_v22  ;;  %2304 = vperm.xlu1 %3097, %v3206_v60   ;;  %v3210_v30 = vpop.eup %3209  ;;  %v2418_v22 = vadd.s32 4294967208, %v3813_v36 }
 0x39a   :  { %v3092_v12 = vpop.f32.mrf.mxu1 }
 0x39b   :  { %2307 = vperm.xlu0 %3096, %v3208_v25   ;;  %3223 = vtanh.f32 %v2098_v0  ;;  %v2101_v24 = vadd.f32 %v3092_v12, %v3760_v27 }
 0x39c   :  { %v2032_v31 = vpop.f32.mrf.mxu1  ;;  %3225 = vtanh.f32 %v2085_v28 }
 0x39d   :  { %v2099_v26 = vadd.f32 %v3760_v27, %v2032_v31  ;;  %2298 = vperm.xlu1 %3097, %v3210_v30  }
 0x39e   :  { %v3212_v49 = vpop.eup %3211 }
 0x39f   :  { %2325 = vperm.xlu0 %3096, %v3212_v49   ;;  %v3214_v32 = vpop.eup %3213  ;;  %3227 = vtanh.f32 %v2099_v26  ;;  %v3873_v26 = vsub.s32 %v2404_v13, %v3816_v44  ;;  %v3876_v49 = vsub.s32 %v2411_v21, %v3816_v44 }
 0x3a0   :  { %v3216_v35 = vpop.eup %3215  ;;  %3229 = vtanh.f32 %v2101_v24 }
 0x3a1   :  { %2316 = vperm.xlu1 %3097, %v3214_v32   ;;  %v3218_v37 = vpop.eup %3217  ;;  %3231 = vtanh.f32 %v2100_v34  ;;  %v2425_v34 = vadd.s32 4294967200, %v3813_v36 }
 0x3a2   :  { %v3220_v38 = vpop.eup %3219 }
 0x3a3   :  { %2319 = vperm.xlu0 %3096, %v3216_v35   ;;  %v3881_v35 = vsub.s32 %v2418_v22, %v3816_v44 }
 0x3a4   :  { %v3222_v40 = vpop.eup %3221 }
 0x3a5   :  { %2310 = vperm.xlu1 %3097, %v3218_v37  }
 0x3a7   :  { %2328 = vperm.xlu0 %3096, %v3220_v38  }
 0x3a8   :  { %v3224_v15 = vpop.eup %3223 }
 0x3a9   :  { %2322 = vperm.xlu1 %3097, %v3222_v40   ;;  %v3226_v42 = vpop.eup %3225  ;;  %v2432_v40 = vadd.s32 4294967192, %v3813_v36 }
 0x3ab   :  { %2331 = vperm.xlu0 %3096, %v3224_v15   ;;  %v3896_v48 = vsub.s32 %v2432_v40, %v3816_v44 }
 0x3ac   :  { %v3228_v17 = vpop.eup %3227 }
 0x3ad   :  { %2292 = vperm.xlu1 %3097, %v3226_v42   ;;  %v3230_v39 = vpop.eup %3229  ;;  %v2439_v42 = vadd.s32 4294967184, %v3813_v36 }
 0x3ae   :  { %v3232_v27 = vpop.eup %3231 }
 0x3af   :  { %2334 = vperm.xlu0 %3096, %v3228_v17   ;;  %v3888_v17 = vsub.s32 %v2425_v34, %v3816_v44  ;;  %v3899_v50 = vsub.s32 %v2439_v42, %v3816_v44 }
 0x3b1   :  { %2340 = vperm.xlu1 %3097, %v3230_v39  }
 0x3b3   :  { %2337 = vperm.xlu0 %3096, %v3232_v27  }
 0x3ca   :  { %v2206_v47 = vpop.permute.xlu0 %2205 }
 0x3cb   :  { %v2359_v61 = vrot.slane %v2206_v47, %v3829_v53 }
 0x3cc   :  { %v2200_v41 = vpop.permute.xlu1 %2199 }
 0x3cd   :  { %v2347_v19 = vrot.slane %v2200_v41, %v3823_v14  ;;  %v2446_v41 = vadd.s32 4294967176, %v3813_v36 }
 0x3cf   :  { %v3903_v58 = vsub.s32 %v2446_v41, %v3816_v44 }
 0x3d0   :  { %v2209_v16 = vpop.permute.xlu1 %2208 }
 0x3d1   :  { %v2366_v63 = vrot.slane %v2209_v16, %v3832_v56 }
 0x3d2   :  { %v2218_v55 = vpop.permute.xlu0 %2217 }
 0x3d3   :  { %v2387_v46 = vrot.slane %v2218_v55, %v3853_v54 }
 0x3d4   :  { %v2203_v59 = vpop.permute.xlu1 %2202 }
 0x3d5   :  { %v2352_v29 = vrot.slane %v2203_v59, %v3826_v52 }
 0x3d6   :  { %v2212_v33 = vpop.permute.xlu0 %2211 }
 0x3d7   :  { %v2354_v1 = vsel %vm2353_vm4, %v2352_v29, %v2347_v19  ;;  %v2373_v2 = vrot.slane %v2212_v33, %v3835_v57 }
 0x3d8   :  { %v2361_v4 = vsel %vm2360_vm5, %v2359_v61, %v2354_v1  ;;  %v2221_v23 = vpop.permute.xlu1 %2220 }
 0x3d9   :  { %v2368_v20 = vsel %vm2367_vm6, %v2366_v63, %v2361_v4  ;;  %v2394_v0 = vrot.slane %v2221_v23, %v3857_v8 }
 0x3da   :  { %v2375_v6 = vsel %vm2374_vm7, %v2373_v2, %v2368_v20  ;;  %v2230_v7 = vpop.permute.xlu0 %2229 }
 0x3db   :  { %v2415_v15 = vrot.slane %v2230_v7, %v3876_v49 }
 0x3dc   :  { %v2215_v10 = vpop.permute.xlu1 %2214 }
 0x3dd   :  { %v2380_v11 = vrot.slane %v2215_v10, %v3850_v5 }
 0x3de   :  { %v2224_v60 = vpop.permute.xlu0 %2223 }
 0x3df   :  { %v2382_v25 = vsel %vm2381_vm8, %v2380_v11, %v2375_v6  ;;  %v2401_v12 = vrot.slane %v2224_v60, %v3860_v9 }
 0x3e0   :  { %v2389_v28 = vsel %vm2388_vm9, %v2387_v46, %v2382_v25  ;;  %v2233_v30 = vpop.permute.xlu1 %2232 }
 0x3e1   :  { %v2396_v31 = vsel %vm2395_vm10, %v2394_v0, %v2389_v28  ;;  %v2422_v27 = vrot.slane %v2233_v30, %v3881_v35 }
 0x3e2   :  { %v2403_v24 = vsel %vm2402_vm11, %v2401_v12, %v2396_v31  ;;  %v2242_v32 = vpop.permute.xlu0 %2241 }
 0x3e3   :  { %v2443_v19 = vrot.slane %v2242_v32, %v3899_v50 }
 0x3e4   :  { %v2227_v37 = vpop.permute.xlu1 %2226 }
 0x3e5   :  { %v2408_v38 = vrot.slane %v2227_v37, %v3873_v26 }
 0x3e6   :  { %v2236_v39 = vpop.permute.xlu0 %2235 }
 0x3e7   :  { %v2410_v18 = vsel %vm2409_vm12, %v2408_v38, %v2403_v24  ;;  %v2429_v16 = vrot.slane %v2236_v39, %v3888_v17 }
 0x3e8   :  { %v2417_v43 = vsel %vm2416_vm13, %v2415_v15, %v2410_v18  ;;  %v2245_v45 = vpop.permute.xlu1 %2244 }
 0x3e9   :  { %v2424_v47 = vsel %vm2423_vm14, %v2422_v27, %v2417_v43  ;;  %v2450_v61 = vrot.slane %v2245_v45, %v3903_v58 }
 0x3ea   :  { %v2254_v55 = vpop.permute.xlu0 %2253  ;;  %v2431_v29 = vsel %vm2430_vm15, %v2429_v16, %v2424_v47 }
 0x3eb   :  { %v2465_v25 = vrot.slane %v2254_v55, %v3829_v53 }
 0x3ec   :  { %v2239_v36 = vpop.permute.xlu1 %2238 }
 0x3ed   :  { %v2436_v59 = vrot.slane %v2239_v36, %v3896_v48 }
 0x3ee   :  { %v2248_v51 = vpop.permute.xlu0 %2247 }
 0x3ef   :  { %v2438_v33 = vsel %vm2437_vm0, %v2436_v59, %v2431_v29  ;;  %v2456_v60 = vrot.slane %v2248_v51, %v3823_v14 }
 0x3f0   :  { %v2445_v62 = vsel %vm2444_vm1, %v2443_v19, %v2438_v33  ;;  %v2257_v63 = vpop.permute.xlu1 %2256 }
 0x3f1   :  { %v3912_v44 = vsel %vm2451_vm2, %v2450_v61, %v2445_v62  ;;  %v2470_v31 = vrot.slane %v2257_v63, %v3832_v56 }
 0x3f2   :  { %v2266_v1 = vpop.permute.xlu0 %2265 }
 0x3f3   :  { %v2485_v18 = vrot.slane %v2266_v1, %v3853_v54 }
 0x3f4   :  { %v2251_v2 = vpop.permute.xlu1 %2250 }
 0x3f5   :  { %v2460_v46 = vrot.slane %v2251_v2, %v3826_v52 }
 0x3f6   :  { %v2260_v4 = vpop.permute.xlu0 %2259 }
 0x3f7   :  { %v2461_v0 = vsel %vm2353_vm4, %v2460_v46, %v2456_v60  ;;  %v2475_v24 = vrot.slane %v2260_v4, %v3835_v57 }
 0x3f8   :  { %v2269_v3 = vpop.permute.xlu1 %2268  ;;  %v2466_v28 = vsel %vm2360_vm5, %v2465_v25, %v2461_v0 }
 0x3f9   :  { %v2471_v34 = vsel %vm2367_vm6, %v2470_v31, %v2466_v28  ;;  %v2490_v36 = vrot.slane %v2269_v3, %v3857_v8 }
 0x3fa   :  { %v2278_v20 = vpop.permute.xlu0 %2277  ;;  %v2476_v40 = vsel %vm2374_vm7, %v2475_v24, %v2471_v34 }
 0x3fc   :  { %v2263_v23 = vpop.permute.xlu1 %2262 }
 0x3fd   :  { %v2480_v37 = vrot.slane %v2263_v23, %v3850_v5  ;;  %v2505_v23 = vrot.slane %v2278_v20, %v3876_v49 }
 0x3fe   :  { %v2272_v10 = vpop.permute.xlu0 %2271 }
 0x3ff   :  { %v2481_v42 = vsel %vm2381_vm8, %v2480_v37, %v2476_v40 }
 0x400   :  { %v3914_v6 = vpop.permute.xlu1 %2280  ;;  %v2486_v47 = vsel %vm2388_vm9, %v2485_v18, %v2481_v42 }
 0x404   :  { %v2275_v7 = vpop.permute.xlu1 %2274 }
 0x405   :  { %v2500_v29 = vrot.slane %v2275_v7, %v3873_v26 }
 0x408   :  { %v3916_v11 = vpop.permute.xlu1 %2289 }
 0x40a   :  { %v2302_v13 = vpop.permute.xlu0 %2301 }
 0x40b   :  { %v2544_v41 = vrot.slane %v2302_v13, %v3829_v53 }
 0x40c   :  { %v2284_v21 = vpop.permute.xlu1 %2283 }
 0x40d   :  { %v2515_v46 = vrot.slane %v2284_v21, %v3888_v17 }
 0x40e   :  { %v2296_v22 = vpop.permute.xlu0 %2295 }
 0x40f   :  { %v2535_v39 = vrot.slane %v2296_v22, %v3823_v14  ;;  %v2495_v14 = vrot.slane %v2272_v10, %v3860_v9  ;;  %v2510_v22 = vrot.slane %v3914_v6, %v3881_v35 }
 0x410   :  { %v2287_v12 = vpop.permute.xlu1 %2286 }
 0x411   :  { %v2520_v20 = vrot.slane %v2287_v12, %v3896_v48 }
 0x412   :  { %v2314_v30 = vpop.permute.xlu0 %2313 }
 0x413   :  { %v2564_v63 = vrot.slane %v2314_v30, %v3853_v54 }
 0x414   :  { %v2305_v32 = vpop.permute.xlu1 %2304 }
 0x415   :  { %v2549_v59 = vrot.slane %v2305_v32, %v3832_v56 }
 0x416   :  { %v2308_v38 = vpop.permute.xlu0 %2307 }
 0x417   :  { %v2554_v51 = vrot.slane %v2308_v38, %v3835_v57 }
 0x418   :  { %v2299_v15 = vpop.permute.xlu1 %2298 }
 0x419   :  { %v2539_v27 = vrot.slane %v2299_v15, %v3826_v52  ;;  %v2491_v52 = vsel %vm2395_vm10, %v2490_v36, %v2486_v47 }
 0x41a   :  { %v2326_v43 = vpop.permute.xlu0 %2325  ;;  %v2496_v62 = vsel %vm2402_vm11, %v2495_v14, %v2491_v52 }
 0x41b   :  { %v2540_v45 = vsel %vm2353_vm4, %v2539_v27, %v2535_v39  ;;  %v2501_v2 = vsel %vm2409_vm12, %v2500_v29, %v2496_v62  ;;  %vm2613_vm4 = vcmask 1042434  }
 0x41c   :  { %v2545_v16 = vsel %vm2360_vm5, %v2544_v41, %v2540_v45  ;;  %v2317_v55 = vpop.permute.xlu1 %2316  ;;  %v2506_v13 = vsel %vm2416_vm13, %v2505_v23, %v2501_v2 }
 0x41d   :  { %v2550_v53 = vsel %vm2367_vm6, %v2549_v59, %v2545_v16  ;;  %v2569_v3 = vrot.slane %v2317_v55, %v3857_v8  ;;  %v2511_v28 = vsel %vm2423_vm14, %v2510_v22, %v2506_v13 }
 0x41e   :  { %v2320_v19 = vpop.permute.xlu0 %2319  ;;  %v2555_v56 = vsel %vm2374_vm7, %v2554_v51, %v2550_v53  ;;  %v2516_v30 = vsel %vm2430_vm15, %v2515_v46, %v2511_v28 }
 0x41f   :  { %v2574_v57 = vrot.slane %v2320_v19, %v3860_v9  ;;  %v2584_v9 = vrot.slane %v2326_v43, %v3876_v49  ;;  %v2521_v24 = vsel %vm2437_vm0, %v2520_v20, %v2516_v30  ;;  %v2525_v49 = vrot.slane %v3916_v11, %v3899_v50 }
 0x420   :  { %v2311_v61 = vpop.permute.xlu1 %2310 }
 0x421   :  { %v2559_v33 = vrot.slane %v2311_v61, %v3850_v5  ;;  %v2526_v38 = vsel %vm2444_vm1, %v2525_v49, %v2521_v24 }
 0x422   :  { %v2329_v1 = vpop.permute.xlu0 %2328 }
 0x423   :  { %v2560_v4 = vsel %vm2381_vm8, %v2559_v33, %v2555_v56  ;;  %v2589_v21 = vrot.slane %v2329_v1, %v3881_v35 }
 0x424   :  { %v2565_v7 = vsel %vm2388_vm9, %v2564_v63, %v2560_v4  ;;  %v2323_v5 = vpop.permute.xlu1 %2322 }
 0x425   :  { %v2570_v10 = vsel %vm2395_vm10, %v2569_v3, %v2565_v7  ;;  %v2579_v54 = vrot.slane %v2323_v5, %v3873_v26 }
 0x426   :  { %v2575_v60 = vsel %vm2402_vm11, %v2574_v57, %v2570_v10  ;;  %v2332_v8 = vpop.permute.xlu0 %2331 }
 0x427   :  { %v2580_v0 = vsel %vm2409_vm12, %v2579_v54, %v2575_v60  ;;  %v2594_v6 = vrot.slane %v2332_v8, %v3888_v17 }
 0x428   :  { %v2293_v25 = vpop.permute.xlu1 %2292  ;;  %v2585_v26 = vsel %vm2416_vm13, %v2584_v9, %v2580_v0 }
 0x429   :  { %v2530_v12 = vrot.slane %v2293_v25, %v3903_v58  ;;  %v2590_v32 = vsel %vm2423_vm14, %v2589_v21, %v2585_v26 }
 0x42a   :  { %v2335_v31 = vpop.permute.xlu0 %2334  ;;  %v2595_v35 = vsel %vm2430_vm15, %v2594_v6, %v2590_v32 }
 0x42b   :  { %v2599_v34 = vrot.slane %v2335_v31, %v3896_v48  ;;  %v2531_v15 = vsel %vm2451_vm2, %v2530_v12, %v2526_v38 }
 0x42c   :  { %v2341_v37 = vpop.permute.xlu1 %2340  ;;  %v2612_v48 = vsel %vm2611_vm3, %v2531_v15, %v3912_v44 }
 0x42d   :  { %v2600_v42 = vsel %vm2437_vm0, %v2599_v34, %v2595_v35  ;;  %v2609_v39 = vrot.slane %v2341_v37, %v3903_v58 }
 0x42e   :  { %v2338_v40 = vpop.permute.xlu0 %2337 }
 0x42f   :  { %v2604_v17 = vrot.slane %v2338_v40, %v3899_v50 }
 0x431   :  { %v2605_v11 = vsel %vm2444_vm1, %v2604_v17, %v2600_v42 }
 0x432   :  { %v2610_v27 = vsel %vm2451_vm2, %v2609_v39, %v2605_v11 }
 0x433   :  { %v2614_v18 = vsel %vm2613_vm4, %v2610_v27, %v2612_v48 }
 0x434   :  { %2616 = vst [vmem:[%s3995_s9] sm:$0x7] %v2614_v18 }

</bundles_post_ra>
